<compile_context>
chip_gen: v7x
topology: tpu7x:2x2x1
jax: 0.10.0
libtpu: 0.0.40
codegen_flags: <defaults>
</compile_context>

<pallas_src>
import jax
import jax.numpy as jnp
import numpy as np
from jax.experimental import pallas as pl
from jax.experimental.pallas import tpu as pltpu

IN_DIM = 3          # in_dim
IN_PAD = 8          # in_dim zero-padded for sublane alignment
H_DIM = 32          # h_dim
OUT_DIM = 32        # out_dim
OUT_LANES = 128     # lane-dense output width per packed pair
N_PTS = 8           # points per cloud
BATCH = 2
N_BLOCKS = 5        # block_0 .. block_4, all ResNetFC(2h -> h)
PACK = 2            # clouds packed per 128-lane group
HP = PACK * H_DIM   # packed hidden width (64)


def pointnet_kernel(p_ref, w_in_ref, b_in_ref,
                    wf0_ref, wf_ref, b0_ref, w1d_ref, b1_ref,
                    w_out_ref, b_out_ref, o_ref):
    n = N_PTS
    rows = p_ref.shape[0]          # pair_tile * N_PTS
    tp = rows // n                 # cloud-pairs in this tile
    bf16 = jnp.bfloat16

    relu = lambda x: jnp.maximum(x, 0.0)

    def mm(x, w):
        # bf16 operands on the MXU, f32 accumulation.
        return jnp.dot(x, w, preferred_element_type=jnp.float32)

    # fc_in: input is already bf16, zero-padded and lane-packed on the host.
    net = mm(p_ref[...], w_in_ref[...]) + b_in_ref[...]                 # (rows, 128) f32

    # block_0 (per-cloud input width 2h): one fused K=256 matmul yields both the
    # shortcut x_s and the fc_0 pre-activation for both packed clouds.
    lhs0 = jnp.concatenate([net, relu(net)], axis=-1).astype(bf16)      # (rows, 256)
    fused = mm(lhs0, wf0_ref[...])                                      # (rows, 128)
    hid = relu(fused[:, HP:] + b0_ref[0])                               # (rows, 64)
    dx = mm(hid.astype(bf16), w1d_ref[0]) + b1_ref[0]
    net = fused[:, :HP] + dx                                            # (rows, 64)

    # blocks 1..4: LHS = [net | relu(net) | pooled | relu(pooled)] (rows, 256)
    # against a host-packed block-diagonal (256, 128) weight -> [x_s | hid_pre].
    def block_body(i, net):
        j = i - 1
        pooled = jnp.max(net.reshape(tp, n, HP), axis=1)                # (tp, 64)
        pool_pair = jnp.concatenate([pooled, relu(pooled)], axis=-1)    # (tp, 128)
        pool_b = jnp.broadcast_to(pool_pair[:, None, :],
                                  (tp, n, 2 * HP)).reshape(rows, 2 * HP)
        lhs = jnp.concatenate([net, relu(net), pool_b], axis=-1).astype(bf16)
        fused = mm(lhs, wf_ref[j])                                      # (rows, 128)
        hid = relu(fused[:, HP:] + b0_ref[i])
        dx = mm(hid.astype(bf16), w1d_ref[i]) + b1_ref[i]
        return fused[:, :HP] + dx

    net = jax.lax.fori_loop(1, N_BLOCKS, block_body, net, unroll=True)

    # Final per-cloud max-pool over the point axis, then fc_out(relu(.)),
    # written as a full 128-lane row (lane-dense store).
    final = jnp.max(net.reshape(tp, n, HP), axis=1)                     # (tp, 64)
    o_ref[...] = mm(relu(final).astype(bf16), w_out_ref[...]) + b_out_ref[...]


def resnet_pointnet(p, params, *, pair_tile=None):
    (w_in, b_in, w0s, b0s, w1s, b1s, wscs, w_out, b_out) = params
    B_in, N, Cin = p.shape
    assert N == N_PTS and Cin == IN_DIM
    f32, bf16 = jnp.float32, jnp.bfloat16
    h = H_DIM

    # Pad the batch to a multiple of PACK (packed clouds stay independent; the
    # padded outputs are sliced off at the end).
    B = ((B_in + PACK - 1) // PACK) * PACK
    if B != B_in:
        p = jnp.concatenate([p, jnp.zeros((B - B_in, N, Cin), p.dtype)], axis=0)
    n_pairs = B // PACK

    if pair_tile is None:
        # v5e / v6e: single TensorCore -> whole batch in one grid step amortizes the
        #   ~600-cycle per-step overhead; vmem_limit_bytes below is raised with the
        #   tile (default scoped limit is only 16 MiB on v5e, 32 MiB on v6e).
        # v7x: pass pair_tile = n_pairs // 2 (it must itself be a multiple of 8, so
        #   this needs n_pairs >= 16) so dimension_semantics="parallel" shards the
        #   grid across both TensorCores, and size the tile so the per-step working
        #   set stays well under the 64 MiB physical VMEM.
        pair_tile = n_pairs
    assert n_pairs % pair_tile == 0
    # (8,128) rule for the output block: the sublane dim must be a multiple of 8
    # unless it spans the whole array.
    assert pair_tile == n_pairs or pair_tile % 8 == 0
    nb = n_pairs // pair_tile
    rows_tile = pair_tile * N

    # ---------------- host-side packing ----------------
    # Points: (B, N, 3) -> (n_pairs*N, PACK*IN_PAD) bf16, clouds of a pair side by
    # side in lanes, zero-padded 3 -> 8 per-cloud input channels.
    p_pack = jnp.zeros((n_pairs, N, PACK, IN_PAD), f32)
    p_pack = p_pack.at[..., :IN_DIM].set(
        jnp.transpose(p.reshape(n_pairs, PACK, N, IN_DIM), (0, 2, 1, 3)).astype(f32))
    p_pack = p_pack.reshape(n_pairs * N, PACK * IN_PAD).astype(bf16)

    # fc_in: per-cloud block-diagonal (16, 128).
    w_in_pack = jnp.zeros((PACK * IN_PAD, PACK * 2 * h), f32)
    for c in range(PACK):
        w_in_pack = w_in_pack.at[c * IN_PAD:c * IN_PAD + IN_DIM,
                                 c * 2 * h:(c + 1) * 2 * h].set(w_in)
    w_in_pack = w_in_pack.astype(bf16)
    b_in_pack = jnp.tile(b_in, (1, PACK))                               # (1, 128)

    # block_0 fused weight (256, 128): LHS = [net | relu(net)] -> [x_s | hid_pre].
    wf0 = jnp.zeros((2 * PACK * 2 * h, 2 * HP), f32)
    for c in range(PACK):
        wf0 = wf0.at[c * 2 * h:(c + 1) * 2 * h, c * h:(c + 1) * h].set(wscs[0])
        wf0 = wf0.at[PACK * 2 * h + c * 2 * h:PACK * 2 * h + (c + 1) * 2 * h,
                     HP + c * h:HP + (c + 1) * h].set(w0s[0])
    wf0 = wf0.astype(bf16)

    # blocks 1..4 fused weights (4, 256, 128):
    # LHS = [net | relu(net) | pooled | relu(pooled)] -> [x_s | hid_pre].
    wf = jnp.zeros((N_BLOCKS - 1, 4 * HP, 2 * HP), f32)
    for i in range(1, N_BLOCKS):
        j = i - 1
        wsca, wscb = wscs[i, :h, :], wscs[i, h:, :]
        w0a, w0b = w0s[i, :h, :], w0s[i, h:, :]
        for c in range(PACK):
            co = c * h
            wf = wf.at[j, co:co + h, co:co + h].set(wsca)                      # net -> x_s
            wf = wf.at[j, HP + co:HP + co + h, HP + co:HP + co + h].set(w0a)   # relu(net) -> hid
            wf = wf.at[j, 2 * HP + co:2 * HP + co + h, co:co + h].set(wscb)    # pooled -> x_s
            wf = wf.at[j, 3 * HP + co:3 * HP + co + h, HP + co:HP + co + h].set(w0b)
    wf = wf.astype(bf16)

    b0_pack = jnp.tile(b0s, (1, 1, PACK))                               # (5, 1, 64)
    b1_pack = jnp.tile(b1s, (1, 1, PACK))                               # (5, 1, 64)

    # fc_1 weights, block-diagonal per packed cloud (5, 64, 64).
    w1d = jnp.zeros((N_BLOCKS, HP, HP), f32)
    for c in range(PACK):
        w1d = w1d.at[:, c * h:(c + 1) * h, c * h:(c + 1) * h].set(w1s)
    w1d = w1d.astype(bf16)

    # fc_out, lane-dense: cloud c's 32 outputs land at lanes c*64 .. c*64+32.
    lane_half = OUT_LANES // PACK
    w_out_pack = jnp.zeros((HP, OUT_LANES), f32)
    b_out_pack = jnp.zeros((1, OUT_LANES), f32)
    for c in range(PACK):
        w_out_pack = w_out_pack.at[c * h:(c + 1) * h,
                                   c * lane_half:c * lane_half + OUT_DIM].set(w_out)
        b_out_pack = b_out_pack.at[:, c * lane_half:c * lane_half + OUT_DIM].set(b_out)
    w_out_pack = w_out_pack.astype(bf16)

    weights = (w_in_pack, b_in_pack, wf0, wf, b0_pack, w1d, b1_pack,
               w_out_pack, b_out_pack)
    weight_bytes = sum(int(w.size) * w.dtype.itemsize for w in weights)

    # ---------------- cost / VMEM hints ----------------
    rows_total = n_pairs * N
    flops_per_row = (2 * (PACK * IN_PAD) * (PACK * 2 * h)               # fc_in
                     + N_BLOCKS * (2 * (4 * HP) * (2 * HP)              # fused block matmul
                                   + 2 * HP * HP))                      # fc_1
    flops = rows_total * flops_per_row + n_pairs * 2 * HP * OUT_LANES
    bytes_accessed = int(p_pack.size) * 2 + n_pairs * OUT_LANES * 4 + weight_bytes
    cost = pl.CostEstimate(flops=flops, transcendentals=0,
                           bytes_accessed=bytes_accessed)

    in_block_bytes = rows_tile * PACK * IN_PAD * 2
    out_block_bytes = pair_tile * OUT_LANES * 4
    act_bytes = rows_tile * (4 * HP) * 4 * 4        # generous live-intermediate estimate
    vmem_est = 2 * (in_block_bytes + out_block_bytes) + weight_bytes + act_bytes
    vmem_limit = int(min(max(2 * vmem_est, 32 * 1024 * 1024), 48 * 1024 * 1024))

    full2 = lambda g: (0, 0)
    full3 = lambda g: (0, 0, 0)

    out = pl.pallas_call(
        pointnet_kernel,
        out_shape=jax.ShapeDtypeStruct((n_pairs, OUT_LANES), f32),
        grid_spec=pltpu.PrefetchScalarGridSpec(
            num_scalar_prefetch=0,
            grid=(nb,),
            in_specs=[
                pl.BlockSpec((rows_tile, PACK * IN_PAD), lambda g: (g, 0)),   # points (bf16)
                pl.BlockSpec((PACK * IN_PAD, PACK * 2 * h), full2),           # fc_in W
                pl.BlockSpec((1, PACK * 2 * h), full2),                       # fc_in b
                pl.BlockSpec((2 * PACK * 2 * h, 2 * HP), full2),              # block_0 fused W
                pl.BlockSpec((N_BLOCKS - 1, 4 * HP, 2 * HP), full3),          # blocks 1..4 fused W
                pl.BlockSpec((N_BLOCKS, 1, HP), full3),                       # fc_0 biases
                pl.BlockSpec((N_BLOCKS, HP, HP), full3),                      # fc_1 W (block-diag)
                pl.BlockSpec((N_BLOCKS, 1, HP), full3),                       # fc_1 biases
                pl.BlockSpec((HP, OUT_LANES), full2),                         # fc_out W
                pl.BlockSpec((1, OUT_LANES), full2),                          # fc_out b
            ],
            out_specs=pl.BlockSpec((pair_tile, OUT_LANES), lambda g: (g, 0)),
        ),
        compiler_params=pltpu.CompilerParams(
            dimension_semantics=("parallel",),
            vmem_limit_bytes=vmem_limit,
        ),
        cost_estimate=cost,
    )(p_pack, *weights)

    z = out.reshape(n_pairs, PACK, lane_half)[:, :, :OUT_DIM].reshape(B, OUT_DIM)
    return z[:B_in]


def make_params(key):
    ks = jax.random.split(key, 16)
    s = 0.1
    w_in = s * jax.random.normal(ks[0], (IN_DIM, 2 * H_DIM), jnp.float32)
    b_in = s * jax.random.normal(ks[1], (1, 2 * H_DIM), jnp.float32)
    w0s = s * jax.random.normal(ks[2], (N_BLOCKS, 2 * H_DIM, H_DIM), jnp.float32)
    b0s = s * jax.random.normal(ks[3], (N_BLOCKS, 1, H_DIM), jnp.float32)
    # PyTorch zero-inits fc_1.weight (nn.init.zeros_); we use small random values
    # so the full fc_1 data path is exercised by the check.  Set to zeros to
    # reproduce the module's initial state exactly.
    w1s = s * jax.random.normal(ks[4], (N_BLOCKS, H_DIM, H_DIM), jnp.float32)
    b1s = s * jax.random.normal(ks[5], (N_BLOCKS, 1, H_DIM), jnp.float32)
    wscs = s * jax.random.normal(ks[6], (N_BLOCKS, 2 * H_DIM, H_DIM), jnp.float32)
    w_out = s * jax.random.normal(ks[7], (H_DIM, OUT_DIM), jnp.float32)
    b_out = s * jax.random.normal(ks[8], (1, OUT_DIM), jnp.float32)
    return (w_in, b_in, w0s, b0s, w1s, b1s, wscs, w_out, b_out)


def reference_forward(p, params):
    """Pure-JAX (f32) mirror of the PyTorch forward (c_dim=None path)."""
    (w_in, b_in, w0s, b0s, w1s, b1s, wscs, w_out, b_out) = params
    relu = lambda x: jnp.maximum(x, 0.0)

    def block(x, i):
        h1 = relu(x) @ w0s[i] + b0s[i, 0]
        dx = relu(h1) @ w1s[i] + b1s[i, 0]
        return x @ wscs[i] + dx

    net = p @ w_in + b_in[0]
    net = block(net, 0)
    for i in range(1, N_BLOCKS):
        pooled = jnp.max(net, axis=1, keepdims=True)
        pooled = jnp.broadcast_to(pooled, net.shape)
        net = block(jnp.concatenate([net, pooled], axis=-1), i)
    net = jnp.max(net, axis=1)
    return relu(net) @ w_out + b_out[0]


if __name__ == "__main__":
    key = jax.random.PRNGKey(0)
    kp, kw = jax.random.split(key)
    p = jax.random.normal(kp, (BATCH, N_PTS, IN_DIM), jnp.float32)
    params = make_params(kw)

    out = resnet_pointnet(p, params)
    out = jax.block_until_ready(out)

    ref = reference_forward(p, params)
    # Kernel runs every matmul in bf16 (f32 accumulation); compare to the f32
    # reference at bf16-level tolerance.
    np.testing.assert_allclose(np.asarray(out), np.asarray(ref), rtol=2e-2, atol=2e-2)

    print("KERNEL_OK")
</pallas_src>

<mosaic_0001>
module attributes {stable_mosaic.version = 11 : i64} {
  func.func @pointnet_kernel(%arg0: i32, %arg1: memref<8x16xbf16, #tpu.memory_space<vmem>>, %arg2: memref<16x128xbf16, #tpu.memory_space<vmem>>, %arg3: memref<1x128xf32, #tpu.memory_space<vmem>>, %arg4: memref<256x128xbf16, #tpu.memory_space<vmem>>, %arg5: memref<4x256x128xbf16, #tpu.memory_space<vmem>>, %arg6: memref<5x1x64xf32, #tpu.memory_space<vmem>>, %arg7: memref<5x64x64xbf16, #tpu.memory_space<vmem>>, %arg8: memref<5x1x64xf32, #tpu.memory_space<vmem>>, %arg9: memref<64x128xbf16, #tpu.memory_space<vmem>>, %arg10: memref<1x128xf32, #tpu.memory_space<vmem>>, %arg11: memref<1x128xf32, #tpu.memory_space<vmem>>) attributes {dimension_semantics = [#tpu.dimension_semantics<parallel>], iteration_bounds = array<i64: 1>, scalar_prefetch = 0 : i64, scratch_operands = 0 : i64, tpu.core_type = #tpu.core_type<tc>, window_params = [{transform_indices = @transform_0, window_bounds = array<i64: 8, 16>}, {pipeline_mode = #tpu.pipeline_mode<synchronous>, transform_indices = @transform_1, window_bounds = array<i64: 16, 128>}, {pipeline_mode = #tpu.pipeline_mode<synchronous>, transform_indices = @transform_2, window_bounds = array<i64: 1, 128>}, {pipeline_mode = #tpu.pipeline_mode<synchronous>, transform_indices = @transform_3, window_bounds = array<i64: 256, 128>}, {pipeline_mode = #tpu.pipeline_mode<synchronous>, transform_indices = @transform_4, window_bounds = array<i64: 4, 256, 128>}, {pipeline_mode = #tpu.pipeline_mode<synchronous>, transform_indices = @transform_5, window_bounds = array<i64: 5, 1, 64>}, {pipeline_mode = #tpu.pipeline_mode<synchronous>, transform_indices = @transform_6, window_bounds = array<i64: 5, 64, 64>}, {pipeline_mode = #tpu.pipeline_mode<synchronous>, transform_indices = @transform_7, window_bounds = array<i64: 5, 1, 64>}, {pipeline_mode = #tpu.pipeline_mode<synchronous>, transform_indices = @transform_8, window_bounds = array<i64: 64, 128>}, {pipeline_mode = #tpu.pipeline_mode<synchronous>, transform_indices = @transform_9, window_bounds = array<i64: 1, 128>}, {transform_indices = @transform_10, window_bounds = array<i64: 1, 128>}]} {
    %c0 = arith.constant 0 : index
    %c0_0 = arith.constant 0 : index
    %0 = vector.load %arg1[%c0, %c0_0] : memref<8x16xbf16, #tpu.memory_space<vmem>>, vector<8x16xbf16>
    %c0_1 = arith.constant 0 : index
    %c0_2 = arith.constant 0 : index
    %1 = vector.load %arg2[%c0_1, %c0_2] : memref<16x128xbf16, #tpu.memory_space<vmem>>, vector<16x128xbf16>
    %cst = arith.constant dense<0.000000e+00> : vector<8x128xf32>
    %2 = tpu.matmul %0, %1, %cst {dimension_numbers = #tpu.dot_dimension_numbers<[1], [0], [0], [1], [0, 0, 1, 1], [], []>} : vector<8x16xbf16>, vector<16x128xbf16>, vector<8x128xf32> -> vector<8x128xf32>
    %c0_3 = arith.constant 0 : index
    %c0_4 = arith.constant 0 : index
    %3 = vector.load %arg3[%c0_3, %c0_4] : memref<1x128xf32, #tpu.memory_space<vmem>>, vector<1x128xf32>
    %4 = vector.broadcast %3 : vector<1x128xf32> to vector<8x128xf32>
    %5 = arith.addf %2, %4 : vector<8x128xf32>
    %cst_5 = arith.constant 0.000000e+00 : f32
    %6 = vector.broadcast %cst_5 : f32 to vector<8x128xf32>
    %7 = arith.maximumf %5, %6 : vector<8x128xf32>
    %8 = tpu.concatenate %5, %7 in 1 : vector<8x128xf32>, vector<8x128xf32> -> vector<8x256xf32>
    %9 = arith.truncf %8 : vector<8x256xf32> to vector<8x256xbf16>
    %c0_6 = arith.constant 0 : index
    %c0_7 = arith.constant 0 : index
    %10 = vector.load %arg4[%c0_6, %c0_7] : memref<256x128xbf16, #tpu.memory_space<vmem>>, vector<256x128xbf16>
    %cst_8 = arith.constant dense<0.000000e+00> : vector<8x128xf32>
    %11 = tpu.matmul %9, %10, %cst_8 {dimension_numbers = #tpu.dot_dimension_numbers<[1], [0], [0], [1], [0, 0, 1, 1], [], []>} : vector<8x256xbf16>, vector<256x128xbf16>, vector<8x128xf32> -> vector<8x128xf32>
    %12 = vector.extract_strided_slice %11 {offsets = [0, 64], sizes = [8, 64], strides = [1, 1]} : vector<8x128xf32> to vector<8x64xf32>
    %c0_9 = arith.constant 0 : index
    %c0_10 = arith.constant 0 : index
    %c0_11 = arith.constant 0 : index
    %13 = vector.load %arg6[%c0_9, %c0_10, %c0_11] : memref<5x1x64xf32, #tpu.memory_space<vmem>>, vector<1x1x64xf32>
    %14 = vector.shape_cast %13 : vector<1x1x64xf32> to vector<1x64xf32>
    %15 = vector.broadcast %14 : vector<1x64xf32> to vector<8x64xf32>
    %16 = arith.addf %12, %15 : vector<8x64xf32>
    %cst_12 = arith.constant 0.000000e+00 : f32
    %17 = vector.broadcast %cst_12 : f32 to vector<8x64xf32>
    %18 = arith.maximumf %16, %17 : vector<8x64xf32>
    %19 = arith.truncf %18 : vector<8x64xf32> to vector<8x64xbf16>
    %c0_13 = arith.constant 0 : index
    %c0_14 = arith.constant 0 : index
    %c0_15 = arith.constant 0 : index
    %20 = vector.load %arg7[%c0_13, %c0_14, %c0_15] : memref<5x64x64xbf16, #tpu.memory_space<vmem>>, vector<1x64x64xbf16>
    %21 = vector.shape_cast %20 : vector<1x64x64xbf16> to vector<64x64xbf16>
    %cst_16 = arith.constant dense<0.000000e+00> : vector<8x64xf32>
    %22 = tpu.matmul %19, %21, %cst_16 {dimension_numbers = #tpu.dot_dimension_numbers<[1], [0], [0], [1], [0, 0, 1, 1], [], []>} : vector<8x64xbf16>, vector<64x64xbf16>, vector<8x64xf32> -> vector<8x64xf32>
    %c0_17 = arith.constant 0 : index
    %c0_18 = arith.constant 0 : index
    %c0_19 = arith.constant 0 : index
    %23 = vector.load %arg8[%c0_17, %c0_18, %c0_19] : memref<5x1x64xf32, #tpu.memory_space<vmem>>, vector<1x1x64xf32>
    %24 = vector.shape_cast %23 : vector<1x1x64xf32> to vector<1x64xf32>
    %25 = vector.broadcast %24 : vector<1x64xf32> to vector<8x64xf32>
    %26 = arith.addf %22, %25 : vector<8x64xf32>
    %27 = vector.extract_strided_slice %11 {offsets = [0, 0], sizes = [8, 64], strides = [1, 1]} : vector<8x128xf32> to vector<8x64xf32>
    %28 = arith.addf %27, %26 : vector<8x64xf32>
    %c1_i32 = arith.constant 1 : i32
    %c1_i32_20 = arith.constant 1 : i32
    %29 = arith.subi %c1_i32, %c1_i32_20 : i32
    %30 = vector.shape_cast %28 : vector<8x64xf32> to vector<1x8x64xf32>
    %cst_21 = arith.constant dense<0xFF800000> : vector<1x64xf32>
    %31 = vector.multi_reduction <maximumf>, %30, %cst_21 [1] : vector<1x8x64xf32> to vector<1x64xf32>
    %cst_22 = arith.constant 0.000000e+00 : f32
    %32 = vector.broadcast %cst_22 : f32 to vector<1x64xf32>
    %33 = arith.maximumf %31, %32 : vector<1x64xf32>
    %34 = tpu.concatenate %31, %33 in 1 : vector<1x64xf32>, vector<1x64xf32> -> vector<1x128xf32>
    %35 = vector.shape_cast %34 : vector<1x128xf32> to vector<1x1x128xf32>
    %36 = vector.shape_cast %35 : vector<1x1x128xf32> to vector<1x1x128xf32>
    %37 = vector.broadcast %36 : vector<1x1x128xf32> to vector<1x8x128xf32>
    %38 = vector.shape_cast %37 : vector<1x8x128xf32> to vector<8x128xf32>
    %cst_23 = arith.constant 0.000000e+00 : f32
    %39 = vector.broadcast %cst_23 : f32 to vector<8x64xf32>
    %40 = arith.maximumf %28, %39 : vector<8x64xf32>
    %41 = tpu.concatenate %28, %40, %38 in 1 : vector<8x64xf32>, vector<8x64xf32>, vector<8x128xf32> -> vector<8x256xf32>
    %42 = arith.truncf %41 : vector<8x256xf32> to vector<8x256xbf16>
    %43 = arith.index_cast %29 : i32 to index
    %c0_24 = arith.constant 0 : index
    %c0_25 = arith.constant 0 : index
    %44 = vector.load %arg5[%43, %c0_24, %c0_25] : memref<4x256x128xbf16, #tpu.memory_space<vmem>>, vector<1x256x128xbf16>
    %45 = vector.shape_cast %44 : vector<1x256x128xbf16> to vector<256x128xbf16>
    %cst_26 = arith.constant dense<0.000000e+00> : vector<8x128xf32>
    %46 = tpu.matmul %42, %45, %cst_26 {dimension_numbers = #tpu.dot_dimension_numbers<[1], [0], [0], [1], [0, 0, 1, 1], [], []>} : vector<8x256xbf16>, vector<256x128xbf16>, vector<8x128xf32> -> vector<8x128xf32>
    %47 = vector.extract_strided_slice %46 {offsets = [0, 64], sizes = [8, 64], strides = [1, 1]} : vector<8x128xf32> to vector<8x64xf32>
    %48 = arith.index_cast %c1_i32 : i32 to index
    %c0_27 = arith.constant 0 : index
    %c0_28 = arith.constant 0 : index
    %49 = vector.load %arg6[%48, %c0_27, %c0_28] : memref<5x1x64xf32, #tpu.memory_space<vmem>>, vector<1x1x64xf32>
    %50 = vector.shape_cast %49 : vector<1x1x64xf32> to vector<1x64xf32>
    %51 = vector.broadcast %50 : vector<1x64xf32> to vector<8x64xf32>
    %52 = arith.addf %47, %51 : vector<8x64xf32>
    %cst_29 = arith.constant 0.000000e+00 : f32
    %53 = vector.broadcast %cst_29 : f32 to vector<8x64xf32>
    %54 = arith.maximumf %52, %53 : vector<8x64xf32>
    %55 = arith.truncf %54 : vector<8x64xf32> to vector<8x64xbf16>
    %56 = arith.index_cast %c1_i32 : i32 to index
    %c0_30 = arith.constant 0 : index
    %c0_31 = arith.constant 0 : index
    %57 = vector.load %arg7[%56, %c0_30, %c0_31] : memref<5x64x64xbf16, #tpu.memory_space<vmem>>, vector<1x64x64xbf16>
    %58 = vector.shape_cast %57 : vector<1x64x64xbf16> to vector<64x64xbf16>
    %cst_32 = arith.constant dense<0.000000e+00> : vector<8x64xf32>
    %59 = tpu.matmul %55, %58, %cst_32 {dimension_numbers = #tpu.dot_dimension_numbers<[1], [0], [0], [1], [0, 0, 1, 1], [], []>} : vector<8x64xbf16>, vector<64x64xbf16>, vector<8x64xf32> -> vector<8x64xf32>
    %60 = arith.index_cast %c1_i32 : i32 to index
    %c0_33 = arith.constant 0 : index
    %c0_34 = arith.constant 0 : index
    %61 = vector.load %arg8[%60, %c0_33, %c0_34] : memref<5x1x64xf32, #tpu.memory_space<vmem>>, vector<1x1x64xf32>
    %62 = vector.shape_cast %61 : vector<1x1x64xf32> to vector<1x64xf32>
    %63 = vector.broadcast %62 : vector<1x64xf32> to vector<8x64xf32>
    %64 = arith.addf %59, %63 : vector<8x64xf32>
    %65 = vector.extract_strided_slice %46 {offsets = [0, 0], sizes = [8, 64], strides = [1, 1]} : vector<8x128xf32> to vector<8x64xf32>
    %66 = arith.addf %65, %64 : vector<8x64xf32>
    %c2_i32 = arith.constant 2 : i32
    %c1_i32_35 = arith.constant 1 : i32
    %67 = arith.subi %c2_i32, %c1_i32_35 : i32
    %68 = vector.shape_cast %66 : vector<8x64xf32> to vector<1x8x64xf32>
    %cst_36 = arith.constant dense<0xFF800000> : vector<1x64xf32>
    %69 = vector.multi_reduction <maximumf>, %68, %cst_36 [1] : vector<1x8x64xf32> to vector<1x64xf32>
    %cst_37 = arith.constant 0.000000e+00 : f32
    %70 = vector.broadcast %cst_37 : f32 to vector<1x64xf32>
    %71 = arith.maximumf %69, %70 : vector<1x64xf32>
    %72 = tpu.concatenate %69, %71 in 1 : vector<1x64xf32>, vector<1x64xf32> -> vector<1x128xf32>
    %73 = vector.shape_cast %72 : vector<1x128xf32> to vector<1x1x128xf32>
    %74 = vector.shape_cast %73 : vector<1x1x128xf32> to vector<1x1x128xf32>
    %75 = vector.broadcast %74 : vector<1x1x128xf32> to vector<1x8x128xf32>
    %76 = vector.shape_cast %75 : vector<1x8x128xf32> to vector<8x128xf32>
    %cst_38 = arith.constant 0.000000e+00 : f32
    %77 = vector.broadcast %cst_38 : f32 to vector<8x64xf32>
    %78 = arith.maximumf %66, %77 : vector<8x64xf32>
    %79 = tpu.concatenate %66, %78, %76 in 1 : vector<8x64xf32>, vector<8x64xf32>, vector<8x128xf32> -> vector<8x256xf32>
    %80 = arith.truncf %79 : vector<8x256xf32> to vector<8x256xbf16>
    %81 = arith.index_cast %67 : i32 to index
    %c0_39 = arith.constant 0 : index
    %c0_40 = arith.constant 0 : index
    %82 = vector.load %arg5[%81, %c0_39, %c0_40] : memref<4x256x128xbf16, #tpu.memory_space<vmem>>, vector<1x256x128xbf16>
    %83 = vector.shape_cast %82 : vector<1x256x128xbf16> to vector<256x128xbf16>
    %cst_41 = arith.constant dense<0.000000e+00> : vector<8x128xf32>
    %84 = tpu.matmul %80, %83, %cst_41 {dimension_numbers = #tpu.dot_dimension_numbers<[1], [0], [0], [1], [0, 0, 1, 1], [], []>} : vector<8x256xbf16>, vector<256x128xbf16>, vector<8x128xf32> -> vector<8x128xf32>
    %85 = vector.extract_strided_slice %84 {offsets = [0, 64], sizes = [8, 64], strides = [1, 1]} : vector<8x128xf32> to vector<8x64xf32>
    %86 = arith.index_cast %c2_i32 : i32 to index
    %c0_42 = arith.constant 0 : index
    %c0_43 = arith.constant 0 : index
    %87 = vector.load %arg6[%86, %c0_42, %c0_43] : memref<5x1x64xf32, #tpu.memory_space<vmem>>, vector<1x1x64xf32>
    %88 = vector.shape_cast %87 : vector<1x1x64xf32> to vector<1x64xf32>
    %89 = vector.broadcast %88 : vector<1x64xf32> to vector<8x64xf32>
    %90 = arith.addf %85, %89 : vector<8x64xf32>
    %cst_44 = arith.constant 0.000000e+00 : f32
    %91 = vector.broadcast %cst_44 : f32 to vector<8x64xf32>
    %92 = arith.maximumf %90, %91 : vector<8x64xf32>
    %93 = arith.truncf %92 : vector<8x64xf32> to vector<8x64xbf16>
    %94 = arith.index_cast %c2_i32 : i32 to index
    %c0_45 = arith.constant 0 : index
    %c0_46 = arith.constant 0 : index
    %95 = vector.load %arg7[%94, %c0_45, %c0_46] : memref<5x64x64xbf16, #tpu.memory_space<vmem>>, vector<1x64x64xbf16>
    %96 = vector.shape_cast %95 : vector<1x64x64xbf16> to vector<64x64xbf16>
    %cst_47 = arith.constant dense<0.000000e+00> : vector<8x64xf32>
    %97 = tpu.matmul %93, %96, %cst_47 {dimension_numbers = #tpu.dot_dimension_numbers<[1], [0], [0], [1], [0, 0, 1, 1], [], []>} : vector<8x64xbf16>, vector<64x64xbf16>, vector<8x64xf32> -> vector<8x64xf32>
    %98 = arith.index_cast %c2_i32 : i32 to index
    %c0_48 = arith.constant 0 : index
    %c0_49 = arith.constant 0 : index
    %99 = vector.load %arg8[%98, %c0_48, %c0_49] : memref<5x1x64xf32, #tpu.memory_space<vmem>>, vector<1x1x64xf32>
    %100 = vector.shape_cast %99 : vector<1x1x64xf32> to vector<1x64xf32>
    %101 = vector.broadcast %100 : vector<1x64xf32> to vector<8x64xf32>
    %102 = arith.addf %97, %101 : vector<8x64xf32>
    %103 = vector.extract_strided_slice %84 {offsets = [0, 0], sizes = [8, 64], strides = [1, 1]} : vector<8x128xf32> to vector<8x64xf32>
    %104 = arith.addf %103, %102 : vector<8x64xf32>
    %c3_i32 = arith.constant 3 : i32
    %c1_i32_50 = arith.constant 1 : i32
    %105 = arith.subi %c3_i32, %c1_i32_50 : i32
    %106 = vector.shape_cast %104 : vector<8x64xf32> to vector<1x8x64xf32>
    %cst_51 = arith.constant dense<0xFF800000> : vector<1x64xf32>
    %107 = vector.multi_reduction <maximumf>, %106, %cst_51 [1] : vector<1x8x64xf32> to vector<1x64xf32>
    %cst_52 = arith.constant 0.000000e+00 : f32
    %108 = vector.broadcast %cst_52 : f32 to vector<1x64xf32>
    %109 = arith.maximumf %107, %108 : vector<1x64xf32>
    %110 = tpu.concatenate %107, %109 in 1 : vector<1x64xf32>, vector<1x64xf32> -> vector<1x128xf32>
    %111 = vector.shape_cast %110 : vector<1x128xf32> to vector<1x1x128xf32>
    %112 = vector.shape_cast %111 : vector<1x1x128xf32> to vector<1x1x128xf32>
    %113 = vector.broadcast %112 : vector<1x1x128xf32> to vector<1x8x128xf32>
    %114 = vector.shape_cast %113 : vector<1x8x128xf32> to vector<8x128xf32>
    %cst_53 = arith.constant 0.000000e+00 : f32
    %115 = vector.broadcast %cst_53 : f32 to vector<8x64xf32>
    %116 = arith.maximumf %104, %115 : vector<8x64xf32>
    %117 = tpu.concatenate %104, %116, %114 in 1 : vector<8x64xf32>, vector<8x64xf32>, vector<8x128xf32> -> vector<8x256xf32>
    %118 = arith.truncf %117 : vector<8x256xf32> to vector<8x256xbf16>
    %119 = arith.index_cast %105 : i32 to index
    %c0_54 = arith.constant 0 : index
    %c0_55 = arith.constant 0 : index
    %120 = vector.load %arg5[%119, %c0_54, %c0_55] : memref<4x256x128xbf16, #tpu.memory_space<vmem>>, vector<1x256x128xbf16>
    %121 = vector.shape_cast %120 : vector<1x256x128xbf16> to vector<256x128xbf16>
    %cst_56 = arith.constant dense<0.000000e+00> : vector<8x128xf32>
    %122 = tpu.matmul %118, %121, %cst_56 {dimension_numbers = #tpu.dot_dimension_numbers<[1], [0], [0], [1], [0, 0, 1, 1], [], []>} : vector<8x256xbf16>, vector<256x128xbf16>, vector<8x128xf32> -> vector<8x128xf32>
    %123 = vector.extract_strided_slice %122 {offsets = [0, 64], sizes = [8, 64], strides = [1, 1]} : vector<8x128xf32> to vector<8x64xf32>
    %124 = arith.index_cast %c3_i32 : i32 to index
    %c0_57 = arith.constant 0 : index
    %c0_58 = arith.constant 0 : index
    %125 = vector.load %arg6[%124, %c0_57, %c0_58] : memref<5x1x64xf32, #tpu.memory_space<vmem>>, vector<1x1x64xf32>
    %126 = vector.shape_cast %125 : vector<1x1x64xf32> to vector<1x64xf32>
    %127 = vector.broadcast %126 : vector<1x64xf32> to vector<8x64xf32>
    %128 = arith.addf %123, %127 : vector<8x64xf32>
    %cst_59 = arith.constant 0.000000e+00 : f32
    %129 = vector.broadcast %cst_59 : f32 to vector<8x64xf32>
    %130 = arith.maximumf %128, %129 : vector<8x64xf32>
    %131 = arith.truncf %130 : vector<8x64xf32> to vector<8x64xbf16>
    %132 = arith.index_cast %c3_i32 : i32 to index
    %c0_60 = arith.constant 0 : index
    %c0_61 = arith.constant 0 : index
    %133 = vector.load %arg7[%132, %c0_60, %c0_61] : memref<5x64x64xbf16, #tpu.memory_space<vmem>>, vector<1x64x64xbf16>
    %134 = vector.shape_cast %133 : vector<1x64x64xbf16> to vector<64x64xbf16>
    %cst_62 = arith.constant dense<0.000000e+00> : vector<8x64xf32>
    %135 = tpu.matmul %131, %134, %cst_62 {dimension_numbers = #tpu.dot_dimension_numbers<[1], [0], [0], [1], [0, 0, 1, 1], [], []>} : vector<8x64xbf16>, vector<64x64xbf16>, vector<8x64xf32> -> vector<8x64xf32>
    %136 = arith.index_cast %c3_i32 : i32 to index
    %c0_63 = arith.constant 0 : index
    %c0_64 = arith.constant 0 : index
    %137 = vector.load %arg8[%136, %c0_63, %c0_64] : memref<5x1x64xf32, #tpu.memory_space<vmem>>, vector<1x1x64xf32>
    %138 = vector.shape_cast %137 : vector<1x1x64xf32> to vector<1x64xf32>
    %139 = vector.broadcast %138 : vector<1x64xf32> to vector<8x64xf32>
    %140 = arith.addf %135, %139 : vector<8x64xf32>
    %141 = vector.extract_strided_slice %122 {offsets = [0, 0], sizes = [8, 64], strides = [1, 1]} : vector<8x128xf32> to vector<8x64xf32>
    %142 = arith.addf %141, %140 : vector<8x64xf32>
    %c4_i32 = arith.constant 4 : i32
    %c1_i32_65 = arith.constant 1 : i32
    %143 = arith.subi %c4_i32, %c1_i32_65 : i32
    %144 = vector.shape_cast %142 : vector<8x64xf32> to vector<1x8x64xf32>
    %cst_66 = arith.constant dense<0xFF800000> : vector<1x64xf32>
    %145 = vector.multi_reduction <maximumf>, %144, %cst_66 [1] : vector<1x8x64xf32> to vector<1x64xf32>
    %cst_67 = arith.constant 0.000000e+00 : f32
    %146 = vector.broadcast %cst_67 : f32 to vector<1x64xf32>
    %147 = arith.maximumf %145, %146 : vector<1x64xf32>
    %148 = tpu.concatenate %145, %147 in 1 : vector<1x64xf32>, vector<1x64xf32> -> vector<1x128xf32>
    %149 = vector.shape_cast %148 : vector<1x128xf32> to vector<1x1x128xf32>
    %150 = vector.shape_cast %149 : vector<1x1x128xf32> to vector<1x1x128xf32>
    %151 = vector.broadcast %150 : vector<1x1x128xf32> to vector<1x8x128xf32>
    %152 = vector.shape_cast %151 : vector<1x8x128xf32> to vector<8x128xf32>
    %cst_68 = arith.constant 0.000000e+00 : f32
    %153 = vector.broadcast %cst_68 : f32 to vector<8x64xf32>
    %154 = arith.maximumf %142, %153 : vector<8x64xf32>
    %155 = tpu.concatenate %142, %154, %152 in 1 : vector<8x64xf32>, vector<8x64xf32>, vector<8x128xf32> -> vector<8x256xf32>
    %156 = arith.truncf %155 : vector<8x256xf32> to vector<8x256xbf16>
    %157 = arith.index_cast %143 : i32 to index
    %c0_69 = arith.constant 0 : index
    %c0_70 = arith.constant 0 : index
    %158 = vector.load %arg5[%157, %c0_69, %c0_70] : memref<4x256x128xbf16, #tpu.memory_space<vmem>>, vector<1x256x128xbf16>
    %159 = vector.shape_cast %158 : vector<1x256x128xbf16> to vector<256x128xbf16>
    %cst_71 = arith.constant dense<0.000000e+00> : vector<8x128xf32>
    %160 = tpu.matmul %156, %159, %cst_71 {dimension_numbers = #tpu.dot_dimension_numbers<[1], [0], [0], [1], [0, 0, 1, 1], [], []>} : vector<8x256xbf16>, vector<256x128xbf16>, vector<8x128xf32> -> vector<8x128xf32>
    %161 = vector.extract_strided_slice %160 {offsets = [0, 64], sizes = [8, 64], strides = [1, 1]} : vector<8x128xf32> to vector<8x64xf32>
    %162 = arith.index_cast %c4_i32 : i32 to index
    %c0_72 = arith.constant 0 : index
    %c0_73 = arith.constant 0 : index
    %163 = vector.load %arg6[%162, %c0_72, %c0_73] : memref<5x1x64xf32, #tpu.memory_space<vmem>>, vector<1x1x64xf32>
    %164 = vector.shape_cast %163 : vector<1x1x64xf32> to vector<1x64xf32>
    %165 = vector.broadcast %164 : vector<1x64xf32> to vector<8x64xf32>
    %166 = arith.addf %161, %165 : vector<8x64xf32>
    %cst_74 = arith.constant 0.000000e+00 : f32
    %167 = vector.broadcast %cst_74 : f32 to vector<8x64xf32>
    %168 = arith.maximumf %166, %167 : vector<8x64xf32>
    %169 = arith.truncf %168 : vector<8x64xf32> to vector<8x64xbf16>
    %170 = arith.index_cast %c4_i32 : i32 to index
    %c0_75 = arith.constant 0 : index
    %c0_76 = arith.constant 0 : index
    %171 = vector.load %arg7[%170, %c0_75, %c0_76] : memref<5x64x64xbf16, #tpu.memory_space<vmem>>, vector<1x64x64xbf16>
    %172 = vector.shape_cast %171 : vector<1x64x64xbf16> to vector<64x64xbf16>
    %cst_77 = arith.constant dense<0.000000e+00> : vector<8x64xf32>
    %173 = tpu.matmul %169, %172, %cst_77 {dimension_numbers = #tpu.dot_dimension_numbers<[1], [0], [0], [1], [0, 0, 1, 1], [], []>} : vector<8x64xbf16>, vector<64x64xbf16>, vector<8x64xf32> -> vector<8x64xf32>
    %174 = arith.index_cast %c4_i32 : i32 to index
    %c0_78 = arith.constant 0 : index
    %c0_79 = arith.constant 0 : index
    %175 = vector.load %arg8[%174, %c0_78, %c0_79] : memref<5x1x64xf32, #tpu.memory_space<vmem>>, vector<1x1x64xf32>
    %176 = vector.shape_cast %175 : vector<1x1x64xf32> to vector<1x64xf32>
    %177 = vector.broadcast %176 : vector<1x64xf32> to vector<8x64xf32>
    %178 = arith.addf %173, %177 : vector<8x64xf32>
    %179 = vector.extract_strided_slice %160 {offsets = [0, 0], sizes = [8, 64], strides = [1, 1]} : vector<8x128xf32> to vector<8x64xf32>
    %180 = arith.addf %179, %178 : vector<8x64xf32>
    %c4_i32_80 = arith.constant 4 : i32
    %181 = vector.shape_cast %180 : vector<8x64xf32> to vector<1x8x64xf32>
    %cst_81 = arith.constant dense<0xFF800000> : vector<1x64xf32>
    %182 = vector.multi_reduction <maximumf>, %181, %cst_81 [1] : vector<1x8x64xf32> to vector<1x64xf32>
    %cst_82 = arith.constant 0.000000e+00 : f32
    %183 = vector.broadcast %cst_82 : f32 to vector<1x64xf32>
    %184 = arith.maximumf %182, %183 : vector<1x64xf32>
    %185 = arith.truncf %184 : vector<1x64xf32> to vector<1x64xbf16>
    %c0_83 = arith.constant 0 : index
    %c0_84 = arith.constant 0 : index
    %186 = vector.load %arg9[%c0_83, %c0_84] : memref<64x128xbf16, #tpu.memory_space<vmem>>, vector<64x128xbf16>
    %cst_85 = arith.constant dense<0.000000e+00> : vector<1x128xf32>
    %187 = tpu.matmul %185, %186, %cst_85 {dimension_numbers = #tpu.dot_dimension_numbers<[1], [0], [0], [1], [0, 0, 1, 1], [], []>} : vector<1x64xbf16>, vector<64x128xbf16>, vector<1x128xf32> -> vector<1x128xf32>
    %c0_86 = arith.constant 0 : index
    %c0_87 = arith.constant 0 : index
    %188 = vector.load %arg10[%c0_86, %c0_87] : memref<1x128xf32, #tpu.memory_space<vmem>>, vector<1x128xf32>
    %189 = arith.addf %187, %188 : vector<1x128xf32>
    %c0_88 = arith.constant 0 : index
    %c0_89 = arith.constant 0 : index
    %190 = vector.load %arg11[%c0_88, %c0_89] : memref<1x128xf32, #tpu.memory_space<vmem>>, vector<1x128xf32>
    tpu.vector_store %arg11[%c0_88, %c0_89], %189 {strides = array<i32>} : memref<1x128xf32, #tpu.memory_space<vmem>>, vector<1x128xf32>,
    return
  }
  func.func @transform_0(%arg0: i32) -> (i32, i32) {
    %c0_i32 = arith.constant 0 : i32
    %c0_i32_0 = arith.constant 0 : i32
    return %arg0, %c0_i32 : i32, i32
  }
  func.func @transform_1(%arg0: i32) -> (i32, i32) {
    %c0_i32 = arith.constant 0 : i32
    %c0_i32_0 = arith.constant 0 : i32
    %c0_i32_1 = arith.constant 0 : i32
    return %c0_i32, %c0_i32_0 : i32, i32
  }
  func.func @transform_2(%arg0: i32) -> (i32, i32) {
    %c0_i32 = arith.constant 0 : i32
    %c0_i32_0 = arith.constant 0 : i32
    %c0_i32_1 = arith.constant 0 : i32
    return %c0_i32, %c0_i32_0 : i32, i32
  }
  func.func @transform_3(%arg0: i32) -> (i32, i32) {
    %c0_i32 = arith.constant 0 : i32
    %c0_i32_0 = arith.constant 0 : i32
    %c0_i32_1 = arith.constant 0 : i32
    return %c0_i32, %c0_i32_0 : i32, i32
  }
  func.func @transform_4(%arg0: i32) -> (i32, i32, i32) {
    %c0_i32 = arith.constant 0 : i32
    %c0_i32_0 = arith.constant 0 : i32
    %c0_i32_1 = arith.constant 0 : i32
    %c0_i32_2 = arith.constant 0 : i32
    return %c0_i32, %c0_i32_0, %c0_i32_1 : i32, i32, i32
  }
  func.func @transform_5(%arg0: i32) -> (i32, i32, i32) {
    %c0_i32 = arith.constant 0 : i32
    %c0_i32_0 = arith.constant 0 : i32
    %c0_i32_1 = arith.constant 0 : i32
    %c0_i32_2 = arith.constant 0 : i32
    return %c0_i32, %c0_i32_0, %c0_i32_1 : i32, i32, i32
  }
  func.func @transform_6(%arg0: i32) -> (i32, i32, i32) {
    %c0_i32 = arith.constant 0 : i32
    %c0_i32_0 = arith.constant 0 : i32
    %c0_i32_1 = arith.constant 0 : i32
    %c0_i32_2 = arith.constant 0 : i32
    return %c0_i32, %c0_i32_0, %c0_i32_1 : i32, i32, i32
  }
  func.func @transform_7(%arg0: i32) -> (i32, i32, i32) {
    %c0_i32 = arith.constant 0 : i32
    %c0_i32_0 = arith.constant 0 : i32
    %c0_i32_1 = arith.constant 0 : i32
    %c0_i32_2 = arith.constant 0 : i32
    return %c0_i32, %c0_i32_0, %c0_i32_1 : i32, i32, i32
  }
  func.func @transform_8(%arg0: i32) -> (i32, i32) {
    %c0_i32 = arith.constant 0 : i32
    %c0_i32_0 = arith.constant 0 : i32
    %c0_i32_1 = arith.constant 0 : i32
    return %c0_i32, %c0_i32_0 : i32, i32
  }
  func.func @transform_9(%arg0: i32) -> (i32, i32) {
    %c0_i32 = arith.constant 0 : i32
    %c0_i32_0 = arith.constant 0 : i32
    %c0_i32_1 = arith.constant 0 : i32
    return %c0_i32, %c0_i32_0 : i32, i32
  }
  func.func @transform_10(%arg0: i32) -> (i32, i32) {
    %c0_i32 = arith.constant 0 : i32
    %c0_i32_0 = arith.constant 0 : i32
    return %arg0, %c0_i32 : i32, i32
  }
}

</mosaic_0001>

<bundles_post_ra>
// kernel: tpu_custom_call.1
= control target key start
LH: loop header
LB: loop body
LE: loop exit
PB: predicated region body
PF: predicated region fallthrough
CT: control target
= control target key end

     0   :  { %15 = vsyncpa [#allocation3], 0  ;;  %s2644_s0 = inlined_call_operand.hbm [shape: bf16[8,16], index: 0, kind: input, shape index: {}]   ;;  %s2645_s1 = inlined_call_operand.hbm [shape: bf16[16,128], index: 1, kind: input, shape index: {}]   ;;  %s2646_s2 = inlined_call_operand.vmem [shape: f32[1,128], index: 2, kind: input, shape index: {}]   ;;  %s2647_s3 = inlined_call_operand.hbm [shape: bf16[256,128], index: 3, kind: input, shape index: {}]   ;;  %s2648_s4 = inlined_call_operand.hbm [shape: bf16[4,256,128], index: 4, kind: input, shape index: {}]   ;;  %s2649_s5 = inlined_call_operand.vmem [shape: f32[5,1,64], index: 5, kind: input, shape index: {}]   ;;  %s2650_s6 = inlined_call_operand.hbm [shape: bf16[5,64,64], index: 6, kind: input, shape index: {}]   ;;  %s2651_s7 = inlined_call_operand.vmem [shape: f32[5,1,64], index: 7, kind: input, shape index: {}]   ;;  %s2652_s8 = inlined_call_operand.hbm [shape: bf16[64,128], index: 8, kind: input, shape index: {}]   ;;  %s2653_s9 = inlined_call_operand.vmem [shape: f32[1,128], index: 9, kind: input, shape index: {}]   ;;  %s2654_s10 = inlined_call_operand.hbm [shape: f32[1,128], index: 10, kind: output, shape index: {}]  }
   0x1   :  { %16 = vsyncpa [#allocation6], 0 }
   0x2   :  { %17 = vsyncpa [#allocation9], 0 }
   0x3   :  { %18 = vsyncpa [#allocation12], 0 }
   0x4   :  { %19 = vsyncpa [#allocation4], 0  ;;  %s2361_s13 = smov [#allocation5]   ;;  %s2197_s17 = scalar_lea.hbm %s2645_s1, 128 }
   0x5   :  { %s35_s14 = sshll.u32 %s2361_s13, 4  ;;  %p2198_p0 = scmp.ne.s32.totalorder %s2645_s1, %s2197_s17  ;;  %s36_s14 = int_to_ptr.vmem [resolvable:$true] %s35_s14 }
   0x6   :  { %p2201_p1 = scmp.lt.u32.totalorder %s2197_s17, %s2645_s1 }
   0x8   :  { %p2203_p2 = pnand %p2201_p1, %p2198_p0 }
   0xa   :  { %2206 = shalt.err (!%p2203_p2)
}
   0xb   :  { %s2207_s22 = scalar_lea.vmem %s36_s14, 128  ;;  %p2212_p4 = scmp.lt.s32.totalorder %s36_s14, %s36_s14 }
   0xc   :  { %p2208_p3 = scmp.ne.s32.totalorder %s36_s14, %s2207_s22  ;;  %p2213_p5 = scmp.lt.s32.totalorder %s2207_s22, %s2207_s22 }
   0xe   :  { %p2214_p6 = por %p2213_p5, %p2212_p4 }
  0x10   :  { %p2215_p7 = pnand %p2214_p6, %p2208_p3 }
  0x12   :  { %2218 = shalt.err (!%p2215_p7)
}
  0x13   :  { %s2362_s23 = smov 64   ;;  %s2363_s24 = smov 4  }
  0x14   :  { %41 = dma.hbm_to_vmem [thread:$0]  %s2645_s1, 128, %s36_s14, [#allocation6], %s2362_s23, %s2362_s23, %s2363_s24  }
  0x15   :  { %s2364_s27 = smov [#allocation8]   ;;  %s2365_s29 = smov [#allocation2]  }
  0x16   :  { %s61_s28 = sshll.u32 %s2364_s27, 4  ;;  %s26_s30 = sshll.u32 %s2365_s29, 4  ;;  %s62_s28 = int_to_ptr.vmem [resolvable:$true] %s61_s28  ;;  %s27_s30 = int_to_ptr.vmem [resolvable:$true] %s26_s30 }
  0x17   :  { %s2219_s13 = scalar_lea.hbm %s2648_s4, 8192 }
  0x18   :  { %p2220_p8 = scmp.ne.s32.totalorder %s2648_s4, %s2219_s13  ;;  %p2223_p9 = scmp.lt.u32.totalorder %s2219_s13, %s2648_s4 }
  0x1a   :  { %p2225_p10 = pnand %p2223_p9, %p2220_p8 }
  0x1c   :  { %2228 = shalt.err (!%p2225_p10)
}
  0x1d   :  { %s2229_s1 = scalar_lea.vmem %s62_s28, 8192  ;;  %p2234_p12 = scmp.lt.s32.totalorder %s62_s28, %s62_s28 }
  0x1e   :  { %p2230_p11 = scmp.ne.s32.totalorder %s62_s28, %s2229_s1  ;;  %p2235_p13 = scmp.lt.s32.totalorder %s2229_s1, %s2229_s1 }
  0x20   :  { %p2236_p0 = por %p2235_p13, %p2234_p12 }
  0x22   :  { %p2237_p1 = pnand %p2236_p0, %p2230_p11 }
  0x24   :  { %2240 = shalt.err (!%p2237_p1)
}
  0x25   :  { %67 = dma.hbm_to_vmem [thread:$0]  %s2648_s4, 8192, %s62_s28, [#allocation9], %s2362_s23, %s2362_s23, %s2363_s24  }
  0x26   :  { %s2241_s22 = scalar_lea.hbm %s2644_s0, 64 }
  0x27   :  { %p2242_p2 = scmp.ne.s32.totalorder %s2644_s0, %s2241_s22  ;;  %p2245_p3 = scmp.lt.u32.totalorder %s2241_s22, %s2644_s0 }
  0x29   :  { %p2247_p4 = pnand %p2245_p3, %p2242_p2 }
  0x2b   :  { %2250 = shalt.err (!%p2247_p4)
}
  0x2c   :  { %s2251_s11 = scalar_lea.vmem %s27_s30, 64  ;;  %p2256_p6 = scmp.lt.s32.totalorder %s27_s30, %s27_s30 }
  0x2d   :  { %p2252_p5 = scmp.ne.s32.totalorder %s27_s30, %s2251_s11  ;;  %p2257_p7 = scmp.lt.s32.totalorder %s2251_s11, %s2251_s11 }
  0x2f   :  { %p2258_p8 = por %p2257_p7, %p2256_p6 }
  0x31   :  { %p2259_p9 = pnand %p2258_p8, %p2252_p5 }
  0x33   :  { %2262 = shalt.err (!%p2259_p9)
}
  0x34   :  { %29 = dma.hbm_to_vmem [thread:$0]  %s2644_s0, 64, %s27_s30, [#allocation3]  }
  0x35   :  { %s2366_s12 = smov [#allocation7]   ;;  %s2367_s15 = smov [#allocation10]  }
  0x36   :  { %s49_s13 = sshll.u32 %s2366_s12, 4  ;;  %s75_s16 = sshll.u32 %s2367_s15, 4  ;;  %s50_s13 = int_to_ptr.vmem [resolvable:$true] %s49_s13  ;;  %s76_s16 = int_to_ptr.vmem [resolvable:$true] %s75_s16 }
  0x37   :  { %s2263_s1 = scalar_lea.hbm %s2647_s3, 2048 }
  0x38   :  { %p2264_p10 = scmp.ne.s32.totalorder %s2647_s3, %s2263_s1  ;;  %p2267_p11 = scmp.lt.u32.totalorder %s2263_s1, %s2647_s3 }
  0x3a   :  { %p2269_p12 = pnand %p2267_p11, %p2264_p10 }
  0x3c   :  { %2272 = shalt.err (!%p2269_p12)
}
  0x3d   :  { %s2273_s0 = scalar_lea.vmem %s50_s13, 2048  ;;  %p2278_p0 = scmp.lt.s32.totalorder %s50_s13, %s50_s13 }
  0x3e   :  { %p2274_p13 = scmp.ne.s32.totalorder %s50_s13, %s2273_s0  ;;  %p2279_p1 = scmp.lt.s32.totalorder %s2273_s0, %s2273_s0 }
  0x40   :  { %p2280_p2 = por %p2279_p1, %p2278_p0 }
  0x42   :  { %p2281_p3 = pnand %p2280_p2, %p2274_p13 }
  0x44   :  { %2284 = shalt.err (!%p2281_p3)
}
  0x45   :  { %55 = dma.hbm_to_vmem [thread:$0]  %s2647_s3, 2048, %s50_s13, [#allocation6], %s2362_s23, %s2362_s23, %s2363_s24  }
  0x46   :  { %s2285_s27 = scalar_lea.hbm %s2650_s6, 2560 }
  0x47   :  { %p2286_p4 = scmp.ne.s32.totalorder %s2650_s6, %s2285_s27  ;;  %p2289_p5 = scmp.lt.u32.totalorder %s2285_s27, %s2650_s6 }
  0x49   :  { %p2291_p6 = pnand %p2289_p5, %p2286_p4 }
  0x4b   :  { %2294 = shalt.err (!%p2291_p6)
}
  0x4c   :  { %s2295_s12 = scalar_lea.vmem %s76_s16, 2560  ;;  %p2300_p8 = scmp.lt.s32.totalorder %s76_s16, %s76_s16 }
  0x4d   :  { %p2296_p7 = scmp.ne.s32.totalorder %s76_s16, %s2295_s12  ;;  %p2301_p9 = scmp.lt.s32.totalorder %s2295_s12, %s2295_s12 }
  0x4f   :  { %p2302_p10 = por %p2301_p9, %p2300_p8 }
  0x51   :  { %p2303_p11 = pnand %p2302_p10, %p2296_p7 }
  0x53   :  { %2306 = shalt.err (!%p2303_p11)
}
  0x54   :  { %81 = dma.hbm_to_vmem [thread:$0]  %s2650_s6, 2560, %s76_s16, [#allocation9], %s2362_s23, %s2362_s23, %s2363_s24  }
  0x55   :  { %s2368_s15 = smov [#allocation11]   ;;  %s2307_s14 = scalar_lea.hbm %s2652_s8, 512 }
  0x56   :  { %s89_s17 = sshll.u32 %s2368_s15, 4  ;;  %p2308_p12 = scmp.ne.s32.totalorder %s2652_s8, %s2307_s14  ;;  %s90_s17 = int_to_ptr.vmem [resolvable:$true] %s89_s17 }
  0x57   :  { %p2311_p13 = scmp.lt.u32.totalorder %s2307_s14, %s2652_s8 }
  0x59   :  { %p2313_p0 = pnand %p2311_p13, %p2308_p12 }
  0x5b   :  { %2316 = shalt.err (!%p2313_p0)
}
  0x5c   :  { %s2317_s30 = scalar_lea.vmem %s90_s17, 512  ;;  %p2322_p2 = scmp.lt.s32.totalorder %s90_s17, %s90_s17 }
  0x5d   :  { %p2318_p1 = scmp.ne.s32.totalorder %s90_s17, %s2317_s30  ;;  %p2323_p3 = scmp.lt.s32.totalorder %s2317_s30, %s2317_s30 }
  0x5f   :  { %p2324_p4 = por %p2323_p3, %p2322_p2 }
  0x61   :  { %p2325_p5 = pnand %p2324_p4, %p2318_p1 }
  0x63   :  { %2328 = shalt.err (!%p2325_p5)
}
  0x64   :  { %95 = dma.hbm_to_vmem [thread:$0]  %s2652_s8, 512, %s90_s17, [#allocation12], %s2362_s23, %s2362_s23, %s2363_s24  }
  0x65   :  { %2351 = dma.done.wait [#allocation3], 64  }
  0x66   :  { %2352 = vsyncadd [#allocation3], 4294967232 }
  0x67   :  { %2353 = dma.done.wait [#allocation6], 2176  }
  0x68   :  { %2354 = vsyncadd [#allocation6], 4294965120 }
  0x69   :  { %2355 = dma.done.wait [#allocation9], 10752  }
  0x6a   :  { %2356 = vsyncadd [#allocation9], 4294956544 }
  0x6b   :  { %2357 = dma.done.wait [#allocation12], 512  }
  0x6c   :  { %2358 = vsyncadd [#allocation12], 4294966784  ;;  %v2369_v0 = vmov 0.0   ;;  %vm2370_vm0 = vmmov 0   ;;  %v2092_v1 = vld [vmem:[#allocation5] sm:$0xff]   ;;  %vm133_vm1 = vcmask 130048  }
  0x6d   :  { %2003 = vmatprep.subr.bf16.mxu0 %v2369_v0  ;;  %2005 = vmatprep.mubr.msk.bf16.mxu0 %vm2370_vm0, %v2369_v0  ;;  %v117_v2 = vld [vmem:[#allocation2] sm:$0xf]  ;;  %v2093_v3 = vld [vmem:[#allocation7 + $0x40] sm:$0xff]   ;;  %v2095_v5 = vld [vmem:[#allocation7 + $0x48] sm:$0xff]   ;;  %vm402_vm2 = vcmask 523264   ;;  %s2371_s21 = smov [#allocation13]  }
  0x6e   :  { %2004 = vmatpush3.bf16.msra.mxu0 %v2092_v1  ;;  %v2094_v4 = vld [vmem:[#allocation7] sm:$0xff]   ;;  %1863 = vmatprep.subr.bf16.mxu1 %v2093_v3  ;;  %v2096_v6 = vld [vmem:[#allocation7 + $0x8] sm:$0xff]   ;;  %v2097_v7 = vld [vmem:[#allocation7 + $0x50] sm:$0xff]   ;;  %s1718_s0 = sshll.u32 %s2371_s21, 4  ;;  %s1719_s0 = int_to_ptr.vmem [resolvable:$true] %s1718_s0 }
  0x6f   :  { %2009 = vmatprep.subr.bf16.mxu0 %v2369_v0  ;;  %1864 = vmatpush3.bf16.msra.mxu1 %v2094_v4  ;;  %v2098_v8 = vld [vmem:[#allocation7 + $0x10] sm:$0xff]   ;;  %v2099_v9 = vld [vmem:[#allocation7 + $0x58] sm:$0xff]   ;;  %v2101_v11 = vld [vmem:[#allocation7 + $0x60] sm:$0xff]   ;;  %s2329_s30 = scalar_lea.vmem %s1719_s0, 16  ;;  %s2333_s6 = scalar_lea.vmem %s1719_s0, 32 }
  0x70   :  { %1865 = vmatprep.subr.bf16.mxu1 %v2095_v5  ;;  %v2100_v10 = vld [vmem:[#allocation7 + $0x18] sm:$0xff]   ;;  %v2102_v12 = vld [vmem:[#allocation7 + $0x20] sm:$0xff]   ;;  %v2103_v13 = vld [vmem:[#allocation7 + $0x68] sm:$0xff]   ;;  %p2330_p6 = scmp.ne.s32.totalorder %s1719_s0, %s2329_s30  ;;  %p2334_p7 = scmp.lt.s32.totalorder %s1719_s0, %s1719_s0 }
  0x71   :  { %2006 = vmatmul.mubr.msk.bf16.vlgmr.msra.gmra.mrb[0].mxu0 %vm133_vm1, %v117_v2  ;;  %v2104_v14 = vld [vmem:[#allocation7 + $0x28] sm:$0xff]   ;;  %v2105_v15 = vld [vmem:[#allocation7 + $0x70] sm:$0xff]   ;;  %v2107_v17 = vld [vmem:[#allocation7 + $0x78] sm:$0xff]   ;;  %p2335_p8 = scmp.lt.s32.totalorder %s2333_s6, %s2329_s30 }
  0x72   :  { %2017 = vmatprep.mubr.msk.bf16.mxu0 %vm2370_vm0, %v2369_v0  ;;  %v2106_v16 = vld [vmem:[#allocation7 + $0x30] sm:$0xff]   ;;  %v2108_v18 = vld [vmem:[#allocation7 + $0x38] sm:$0xff]   ;;  %v1749_v19 = vld [vmem:[%s2649_s5] ss:$0 sm:$0xff] }
  0x73   :  { %1866 = vmatpush3.bf16.msra.mxu1 %v2096_v6  ;;  %354 = vrot.lane.b32.xlu0 %v1749_v19, %s2362_s23  ;;  %v1730_v20 = vld [vmem:[%s2646_s2] ss:$0 sm:$0xff]  ;;  %v2110_v30 = vld [vmem:[#allocation10 + $0x8] sm:$0xff]   ;;  %v2111_v31 = vld [vmem:[#allocation10 + $0x10] sm:$0xff]   ;;  %p2336_p9 = por %p2335_p8, %p2334_p7 }
  0x74   :  { %1867 = vmatprep.subr.bf16.mxu1 %v2097_v7  ;;  %v2109_v29 = vld [vmem:[#allocation10] sm:$0xff]   ;;  %v2112_v32 = vld [vmem:[#allocation10 + $0x18] sm:$0xff]   ;;  %v2115_v45 = vld [vmem:[#allocation8 + $0x48] sm:$0xff]  }
  0x75   :  { %2010 = vmatpush3.bf16.msra.mxu0 %v2109_v29  ;;  %v2113_v43 = vld [vmem:[#allocation8 + $0x40] sm:$0xff]   ;;  %v2116_v46 = vld [vmem:[#allocation8 + $0x8] sm:$0xff]   ;;  %v2117_v47 = vld [vmem:[#allocation8 + $0x50] sm:$0xff]   ;;  %p2337_p10 = pnand %p2336_p9, %p2330_p6 }
  0x76   :  { %2011 = vmatprep.subr.bf16.mxu0 %v2369_v0  ;;  %v2114_v44 = vld [vmem:[#allocation8] sm:$0xff]   ;;  %v2118_v48 = vld [vmem:[#allocation8 + $0x10] sm:$0xff]   ;;  %v2119_v49 = vld [vmem:[#allocation8 + $0x58] sm:$0xff]  }
  0x77   :  { %1868 = vmatpush3.bf16.msra.mxu1 %v2098_v8  ;;  %v2120_v50 = vld [vmem:[#allocation8 + $0x18] sm:$0xff]   ;;  %v2121_v51 = vld [vmem:[#allocation8 + $0x60] sm:$0xff]   ;;  %v2123_v53 = vld [vmem:[#allocation8 + $0x68] sm:$0xff]  }
  0x78   :  { %1869 = vmatprep.subr.bf16.mxu1 %v2099_v9  ;;  %v2122_v52 = vld [vmem:[#allocation8 + $0x20] sm:$0xff]   ;;  %v2124_v54 = vld [vmem:[#allocation8 + $0x28] sm:$0xff]   ;;  %v2125_v55 = vld [vmem:[#allocation8 + $0x70] sm:$0xff]  }
  0x79   :  { %2012 = vmatpush3.bf16.msra.mxu0 %v2110_v30  ;;  %v1750_v56 = vld [vmem:[%s2651_s7] ss:$0 sm:$0xff]  ;;  %v2126_v1 = vld [vmem:[#allocation8 + $0x30] sm:$0xff]   ;;  %v2127_v4 = vld [vmem:[#allocation8 + $0x78] sm:$0xff]  }
  0x7a   :  { %2013 = vmatprep.subr.bf16.mxu0 %v2369_v0  ;;  %v2128_v5 = vld [vmem:[#allocation8 + $0x38] sm:$0xff]   ;;  %v1773_v9 = vld [vmem:[%s2649_s5 + $0x1] ss:$0 sm:$0xff] }
  0x7b   :  { %1870 = vmatpush3.bf16.msra.mxu1 %v2100_v10 }
  0x7c   :  { %1871 = vmatprep.subr.bf16.mxu1 %v2101_v11 }
  0x7d   :  { %2014 = vmatpush3.bf16.msra.mxu0 %v2111_v31 }
  0x7e   :  { %2015 = vmatprep.subr.bf16.mxu0 %v2369_v0 }
  0x7f   :  { %1872 = vmatpush3.bf16.msra.mxu1 %v2102_v12 }
  0x80   :  { %1873 = vmatprep.subr.bf16.mxu1 %v2103_v13  ;;  %v460_v13 = vlaneseq }
  0x81   :  { %2016 = vmatpush3.bf16.msra.mxu0 %v2112_v32 }
  0x82   :  { %1890 = vmatprep.subr.bf16.mxu0 %v2113_v43  ;;  %v2139_v43 = vld [vmem:[#allocation8 + $0xd8] sm:$0xff]  }
  0x83   :  { %1874 = vmatpush3.bf16.msra.mxu1 %v2104_v14  ;;  %v461_v14 = vshrl.u32 %v460_v13, 7 }
  0x84   :  { %1875 = vmatprep.subr.bf16.mxu1 %v2105_v15 }
  0x85   :  { %v2546_v15 = vsub.s32 0, %v461_v14  ;;  %v2149_v14 = vld [vmem:[#allocation10 + $0x40] sm:$0xff]  }
  0x87   :  { %1876 = vmatpush3.bf16.msra.mxu1 %v2106_v16 }
  0x88   :  { %1877 = vmatprep.subr.bf16.mxu1 %v2107_v17 }
  0x8b   :  { %1878 = vmatpush3.bf16.msra.mxu1 %v2108_v18 }
  0x8c   :  { %2021 = vmatprep.subr.bf16.mxu1 %v2369_v0 }
  0xe5   :  { %v355_v35 = vpop.permute.xlu0 %354 }
 0x144   :  { %v171_v21 = vpop.f32.mrb[0].mxu0 }
 0x145   :  { %v172_v22 = vadd.f32 %v1730_v20, %v171_v21  ;;  %v2007_v23 = vpop.f32.mrb[1].mxu0 }
 0x146   :  { %v174_v24 = vpop.f32.mrb[2].mxu0  ;;  %v2129_v23 = vld [vmem:[#allocation10 + $0x20] sm:$0xff]  }
 0x147   :  { %v2008_v25 = vpop.f32.mrb[3].mxu0  ;;  %v177_v26 = vmax.f32 %v172_v22, 0.0  ;;  %v178_v28 = vpack.c.bf16 %v172_v22, %v172_v22  ;;  %v2130_v24 = vld [vmem:[#allocation10 + $0x28] sm:$0xff]  }
 0x148   :  { %v2131_v25 = vld [vmem:[#allocation10 + $0x30] sm:$0xff]  }
 0x149   :  { %v179_v27 = vpack.c.bf16 %v177_v26, %v177_v26  ;;  %v2132_v26 = vld [vmem:[#allocation10 + $0x38] sm:$0xff]  }
 0x14b   :  { %340 = vmatprep.mubr.bf16.mxu1 %v179_v27 }
 0x14c   :  { %341 = vmatmul.mubr.bf16.vlgmr.msra.gmra.mrb[0].mxu1 %v178_v28 }
 0x14d   :  { %2029 = vmatprep.mubr.msk.bf16.mxu1 %vm2370_vm0, %v2369_v0  ;;  %2022 = vmatpush3.bf16.msra.mxu1 %v2129_v23 }
 0x14e   :  { %2023 = vmatprep.subr.bf16.mxu1 %v2369_v0 }
 0x151   :  { %2024 = vmatpush3.bf16.msra.mxu1 %v2130_v24 }
 0x152   :  { %2025 = vmatprep.subr.bf16.mxu1 %v2369_v0 }
 0x155   :  { %2026 = vmatpush3.bf16.msra.mxu1 %v2131_v25 }
 0x156   :  { %2027 = vmatprep.subr.bf16.mxu1 %v2369_v0 }
 0x159   :  { %2028 = vmatpush3.bf16.msra.mxu1 %v2132_v26 }
 0x21f   :  { %v1879_v33 = vpop.f32.mrb[0].mxu1 }
 0x220   :  { %v1880_v34 = vpop.f32.mrb[1].mxu1 }
 0x221   :  { %v1881_v36 = vadd.f32 %v1880_v34, %v1879_v33  ;;  %v1882_v37 = vpop.f32.mrb[2].mxu1 }
 0x222   :  { %v1883_v38 = vpop.f32.mrb[3].mxu1  ;;  %v2133_v37 = vld [vmem:[#allocation8 + $0xc0] sm:$0xff]  }
 0x223   :  { %v357_v39 = vadd.f32 %v1881_v36, %v355_v35  ;;  %v2134_v38 = vld [vmem:[#allocation8 + $0x80] sm:$0xff]   ;;  %1917 = vmatprep.subr.bf16.mxu1 %v2133_v37 }
 0x224   :  { %v2161_v37 = vld [vmem:[#allocation8 + $0x160] sm:$0xff]  }
 0x225   :  { %v358_v40 = vmax.f32 %v357_v39, 0.0  ;;  %v2135_v39 = vld [vmem:[#allocation8 + $0xc8] sm:$0xff]  }
 0x227   :  { %v359_v41 = vpack.c.bf16 %v358_v40, %v358_v40  ;;  %v2136_v40 = vld [vmem:[#allocation8 + $0x88] sm:$0xff]  }
 0x229   :  { %376 = vrot.lane.b32.xlu0 %v359_v41, %s2362_s23  ;;  %v2137_v41 = vld [vmem:[#allocation8 + $0xd0] sm:$0xff]  }
 0x22d   :  { %647 = vrot.lane.b32.xlu0 %v1773_v9, %s2362_s23 }
 0x29b   :  { %v377_v42 = vpop.permute.xlu0 %376 }
 0x29c   :  { %2018 = vmatmul.mubr.msk.bf16.vlgmr.msra.gmra.mrb[4].mxu0 %vm402_vm2, %v377_v42  ;;  %v2138_v42 = vld [vmem:[#allocation8 + $0x90] sm:$0xff]  }
 0x29d   :  { %1891 = vmatpush3.bf16.msra.mxu0 %v2114_v44  ;;  %v2140_v44 = vld [vmem:[#allocation8 + $0x98] sm:$0xff]  }
 0x29e   :  { %1892 = vmatprep.subr.bf16.mxu0 %v2115_v45  ;;  %v2141_v45 = vld [vmem:[#allocation8 + $0xe0] sm:$0xff]  }
 0x29f   :  { %v648_v29 = vpop.permute.xlu0 %647 }
 0x2a1   :  { %1893 = vmatpush3.bf16.msra.mxu0 %v2116_v46  ;;  %v2142_v46 = vld [vmem:[#allocation8 + $0xa0] sm:$0xff]  }
 0x2a2   :  { %1894 = vmatprep.subr.bf16.mxu0 %v2117_v47  ;;  %v2143_v47 = vld [vmem:[#allocation8 + $0xe8] sm:$0xff]  }
 0x2a5   :  { %1895 = vmatpush3.bf16.msra.mxu0 %v2118_v48  ;;  %v1775_v48 = vld [vmem:[%s2651_s7 + $0x1] ss:$0 sm:$0xff] }
 0x2a6   :  { %1896 = vmatprep.subr.bf16.mxu0 %v2119_v49  ;;  %v2144_v49 = vld [vmem:[#allocation8 + $0xa8] sm:$0xff]  }
 0x2a9   :  { %1897 = vmatpush3.bf16.msra.mxu0 %v2120_v50  ;;  %v2145_v50 = vld [vmem:[#allocation8 + $0xf0] sm:$0xff]  }
 0x2aa   :  { %1898 = vmatprep.subr.bf16.mxu0 %v2121_v51 }
 0x2ad   :  { %1899 = vmatpush3.bf16.msra.mxu0 %v2122_v52 }
 0x2ae   :  { %1900 = vmatprep.subr.bf16.mxu0 %v2123_v53 }
 0x2b1   :  { %1901 = vmatpush3.bf16.msra.mxu0 %v2124_v54 }
 0x2b2   :  { %1902 = vmatprep.subr.bf16.mxu0 %v2125_v55  ;;  %v2146_v55 = vld [vmem:[#allocation8 + $0xb0] sm:$0xff]  }
 0x2b5   :  { %1903 = vmatpush3.bf16.msra.mxu0 %v2126_v1 }
 0x2b6   :  { %1904 = vmatprep.subr.bf16.mxu0 %v2127_v4 }
 0x2b9   :  { %1905 = vmatpush3.bf16.msra.mxu0 %v2128_v5 }
 0x2ba   :  { %2033 = vmatprep.subr.bf16.mxu0 %v2369_v0 }
 0x36f   :  { %v440_v57 = vpop.f32.mrb[4].mxu0 }
 0x370   :  { %v441_v58 = vadd.f32 %v1750_v56, %v440_v57  ;;  %v2019_v59 = vpop.f32.mrb[5].mxu0 }
 0x371   :  { %v443_v60 = vpop.f32.mrb[6].mxu0 }
 0x372   :  { %v446_v61 = vadd.f32 %v1881_v36, %v441_v58  ;;  %v2020_v62 = vpop.f32.mrb[7].mxu0 }
 0x374   :  { %v447_v63 = vsel %vm402_vm2, %v446_v61, -inf  ;;  %v464_v12 = vmax.f32 %v446_v61, 0.0 }
 0x375   :  { %v448_v2 = vrot.slane %v447_v63, 4 }
 0x377   :  { %v449_v3 = vmax.f32 %v447_v63, %v448_v2  ;;  %v2148_v63 = vld [vmem:[#allocation8 + $0xb8] sm:$0xff]  }
 0x379   :  { %v450_v6 = vrot.slane %v449_v3, 2 }
 0x37b   :  { %v451_v7 = vmax.f32 %v449_v3, %v450_v6  ;;  %v1798_v6 = vld [vmem:[%s2649_s5 + $0x2] ss:$0 sm:$0xff] }
 0x37d   :  { %v452_v8 = vrot.slane %v451_v7, 1 }
 0x37f   :  { %v453_v10 = vmax.f32 %v451_v7, %v452_v8 }
 0x381   :  { %v454_v11 = vmax.f32 %v453_v10, 0.0 }
 0x383   :  { %456 = vrot.lane.b32.xlu1 %v454_v11, %s2362_s23 }
 0x387   :  { %466 = vrot.lane.b32.xlu1 %v464_v12, %s2362_s23 }
 0x3f5   :  { %v457_v16 = vpop.permute.xlu1 %456 }
 0x3f6   :  { %v459_v17 = vsel %vm402_vm2, %v453_v10, %v457_v16  ;;  %v2150_v16 = vld [vmem:[#allocation10 + $0x48] sm:$0xff]  }
 0x3f7   :  { %v463_v18 = vrot.slane %v459_v17, %v2546_v15  ;;  %v2151_v17 = vld [vmem:[#allocation10 + $0x50] sm:$0xff]  }
 0x3f9   :  { %v471_v19 = vpack.c.bf16 %v463_v18, %v463_v18  ;;  %v467_v20 = vpop.permute.xlu1 %466  ;;  %v2152_v18 = vld [vmem:[#allocation10 + $0x58] sm:$0xff]  }
 0x3fa   :  { %v469_v21 = vsel %vm402_vm2, %v446_v61, %v467_v20  ;;  %v2147_v61 = vld [vmem:[#allocation8 + $0xf8] sm:$0xff]  }
 0x3fb   :  { %v470_v22 = vpack.c.bf16 %v469_v21, %v469_v21  ;;  %632 = vmatprep.mubr.bf16.mxu0 %v471_v19 }
 0x3fd   :  { %633 = vmatmul.mubr.bf16.vlgmr.msra.gmra.mrb[8].mxu0 %v470_v22 }
 0x3fe   :  { %2041 = vmatprep.mubr.msk.bf16.mxu0 %vm2370_vm0, %v2369_v0  ;;  %2034 = vmatpush3.bf16.msra.mxu0 %v2149_v14 }
 0x3ff   :  { %2035 = vmatprep.subr.bf16.mxu0 %v2369_v0 }
 0x402   :  { %2036 = vmatpush3.bf16.msra.mxu0 %v2150_v16 }
 0x403   :  { %2037 = vmatprep.subr.bf16.mxu0 %v2369_v0 }
 0x406   :  { %2038 = vmatpush3.bf16.msra.mxu0 %v2151_v17 }
 0x407   :  { %2039 = vmatprep.subr.bf16.mxu0 %v2369_v0 }
 0x40a   :  { %2040 = vmatpush3.bf16.msra.mxu0 %v2152_v18 }
 0x4d0   :  { %v1906_v27 = vpop.f32.mrb[8].mxu0 }
 0x4d1   :  { %v1907_v28 = vpop.f32.mrb[9].mxu0 }
 0x4d2   :  { %v1908_v30 = vadd.f32 %v1907_v28, %v1906_v27  ;;  %v1909_v31 = vpop.f32.mrb[10].mxu0 }
 0x4d3   :  { %v1910_v32 = vpop.f32.mrb[11].mxu0  ;;  %v2155_v31 = vld [vmem:[#allocation8 + $0x148] sm:$0xff]  }
 0x4d4   :  { %v650_v33 = vadd.f32 %v1908_v30, %v648_v29  ;;  %v2153_v29 = vld [vmem:[#allocation8 + $0x140] sm:$0xff]   ;;  %v2156_v32 = vld [vmem:[#allocation8 + $0x108] sm:$0xff]  }
 0x4d5   :  { %1944 = vmatprep.subr.bf16.mxu0 %v2153_v29  ;;  %v2181_v29 = vld [vmem:[#allocation8 + $0x1e0] sm:$0xff]  }
 0x4d6   :  { %v651_v34 = vmax.f32 %v650_v33, 0.0  ;;  %v2157_v33 = vld [vmem:[#allocation8 + $0x150] sm:$0xff]  }
 0x4d8   :  { %v652_v35 = vpack.c.bf16 %v651_v34, %v651_v34  ;;  %v2158_v34 = vld [vmem:[#allocation8 + $0x110] sm:$0xff]  }
 0x4da   :  { %671 = vrot.lane.b32.xlu1 %v652_v35, %s2362_s23  ;;  %v2159_v35 = vld [vmem:[#allocation8 + $0x158] sm:$0xff]  }
 0x54c   :  { %v672_v36 = vpop.permute.xlu1 %671 }
 0x54d   :  { %2030 = vmatmul.mubr.msk.bf16.vlgmr.msra.gmra.mrb[4].mxu1 %vm402_vm2, %v672_v36  ;;  %v2160_v36 = vld [vmem:[#allocation8 + $0x118] sm:$0xff]  }
 0x54e   :  { %1918 = vmatpush3.bf16.msra.mxu1 %v2134_v38  ;;  %v2162_v38 = vld [vmem:[#allocation8 + $0x120] sm:$0xff]  }
 0x54f   :  { %1919 = vmatprep.subr.bf16.mxu1 %v2135_v39  ;;  %v2163_v39 = vld [vmem:[#allocation8 + $0x168] sm:$0xff]  }
 0x552   :  { %1920 = vmatpush3.bf16.msra.mxu1 %v2136_v40  ;;  %v1800_v40 = vld [vmem:[%s2651_s7 + $0x2] ss:$0 sm:$0xff] }
 0x553   :  { %1921 = vmatprep.subr.bf16.mxu1 %v2137_v41  ;;  %v2164_v41 = vld [vmem:[#allocation8 + $0x128] sm:$0xff]  }
 0x556   :  { %1922 = vmatpush3.bf16.msra.mxu1 %v2138_v42  ;;  %v2165_v42 = vld [vmem:[#allocation8 + $0x170] sm:$0xff]  }
 0x557   :  { %1923 = vmatprep.subr.bf16.mxu1 %v2139_v43 }
 0x55a   :  { %1924 = vmatpush3.bf16.msra.mxu1 %v2140_v44 }
 0x55b   :  { %1925 = vmatprep.subr.bf16.mxu1 %v2141_v45 }
 0x55e   :  { %1926 = vmatpush3.bf16.msra.mxu1 %v2142_v46 }
 0x55f   :  { %1927 = vmatprep.subr.bf16.mxu1 %v2143_v47  ;;  %v2166_v47 = vld [vmem:[#allocation8 + $0x130] sm:$0xff]  }
 0x562   :  { %1928 = vmatpush3.bf16.msra.mxu1 %v2144_v49 }
 0x563   :  { %1929 = vmatprep.subr.bf16.mxu1 %v2145_v50 }
 0x566   :  { %1930 = vmatpush3.bf16.msra.mxu1 %v2146_v55  ;;  %v2168_v55 = vld [vmem:[#allocation8 + $0x138] sm:$0xff]  }
 0x567   :  { %1931 = vmatprep.subr.bf16.mxu1 %v2147_v61  ;;  %v1823_v61 = vld [vmem:[%s2649_s5 + $0x3] ss:$0 sm:$0xff] }
 0x56a   :  { %1932 = vmatpush3.bf16.msra.mxu1 %v2148_v63 }
 0x56b   :  { %2045 = vmatprep.subr.bf16.mxu1 %v2369_v0 }
 0x620   :  { %v734_v51 = vpop.f32.mrb[4].mxu1 }
 0x621   :  { %v735_v52 = vadd.f32 %v1775_v48, %v734_v51  ;;  %v2031_v53 = vpop.f32.mrb[5].mxu1 }
 0x622   :  { %v737_v54 = vpop.f32.mrb[6].mxu1  ;;  %v2167_v53 = vld [vmem:[#allocation8 + $0x178] sm:$0xff]  }
 0x623   :  { %v740_v56 = vadd.f32 %v1908_v30, %v735_v52  ;;  %v2032_v57 = vpop.f32.mrb[7].mxu1  ;;  %v2154_v30 = vld [vmem:[#allocation8 + $0x100] sm:$0xff]  }
 0x625   :  { %v741_v58 = vsel %vm402_vm2, %v740_v56, -inf  ;;  %v758_v59 = vmax.f32 %v740_v56, 0.0 }
 0x626   :  { %v742_v60 = vrot.slane %v741_v58, 4 }
 0x627   :  { %760 = vrot.lane.b32.xlu1 %v758_v59, %s2362_s23 }
 0x628   :  { %v743_v62 = vmax.f32 %v741_v58, %v742_v60 }
 0x62a   :  { %v744_v1 = vrot.slane %v743_v62, 2 }
 0x62c   :  { %v745_v2 = vmax.f32 %v743_v62, %v744_v1 }
 0x62e   :  { %v746_v3 = vrot.slane %v745_v2, 1 }
 0x630   :  { %v747_v4 = vmax.f32 %v745_v2, %v746_v3 }
 0x632   :  { %v748_v5 = vmax.f32 %v747_v4, 0.0 }
 0x634   :  { %750 = vrot.lane.b32.xlu0 %v748_v5, %s2362_s23 }
 0x638   :  { %942 = vrot.lane.b32.xlu0 %v1798_v6, %s2362_s23  ;;  %v2169_v6 = vld [vmem:[#allocation10 + $0x60] sm:$0xff]  }
 0x699   :  { %v761_v7 = vpop.permute.xlu1 %760 }
 0x69a   :  { %v763_v10 = vsel %vm402_vm2, %v740_v56, %v761_v7  ;;  %v2170_v7 = vld [vmem:[#allocation10 + $0x68] sm:$0xff]  }
 0x69b   :  { %v764_v13 = vpack.c.bf16 %v763_v10, %v763_v10 }
 0x6a6   :  { %v751_v8 = vpop.permute.xlu0 %750 }
 0x6a7   :  { %v753_v9 = vsel %vm402_vm2, %v747_v4, %v751_v8  ;;  %v2171_v8 = vld [vmem:[#allocation10 + $0x70] sm:$0xff]  }
 0x6a8   :  { %v757_v11 = vrot.slane %v753_v9, %v2546_v15  ;;  %v2172_v9 = vld [vmem:[#allocation10 + $0x78] sm:$0xff]  }
 0x6aa   :  { %v765_v12 = vpack.c.bf16 %v757_v11, %v757_v11  ;;  %v943_v21 = vpop.permute.xlu0 %942 }
 0x6ac   :  { %927 = vmatprep.mubr.bf16.mxu1 %v765_v12 }
 0x6ad   :  { %928 = vmatmul.mubr.bf16.vlgmr.msra.gmra.mrb[8].mxu1 %v764_v13 }
 0x6ae   :  { %2053 = vmatprep.mubr.msk.bf16.mxu1 %vm2370_vm0, %v2369_v0  ;;  %2046 = vmatpush3.bf16.msra.mxu1 %v2169_v6 }
 0x6af   :  { %2047 = vmatprep.subr.bf16.mxu1 %v2369_v0 }
 0x6b2   :  { %2048 = vmatpush3.bf16.msra.mxu1 %v2170_v7 }
 0x6b3   :  { %2049 = vmatprep.subr.bf16.mxu1 %v2369_v0 }
 0x6b6   :  { %2050 = vmatpush3.bf16.msra.mxu1 %v2171_v8 }
 0x6b7   :  { %2051 = vmatprep.subr.bf16.mxu1 %v2369_v0 }
 0x6ba   :  { %2052 = vmatpush3.bf16.msra.mxu1 %v2172_v9 }
 0x780   :  { %v1933_v19 = vpop.f32.mrb[8].mxu1 }
 0x781   :  { %v1934_v20 = vpop.f32.mrb[9].mxu1 }
 0x782   :  { %v1935_v22 = vadd.f32 %v1934_v20, %v1933_v19  ;;  %v1936_v23 = vpop.f32.mrb[10].mxu1 }
 0x783   :  { %v1937_v24 = vpop.f32.mrb[11].mxu1  ;;  %v2175_v23 = vld [vmem:[#allocation8 + $0x1c8] sm:$0xff]  }
 0x784   :  { %v945_v25 = vadd.f32 %v1935_v22, %v943_v21  ;;  %v2173_v21 = vld [vmem:[#allocation8 + $0x1c0] sm:$0xff]   ;;  %v2176_v24 = vld [vmem:[#allocation8 + $0x188] sm:$0xff]  }
 0x785   :  { %1971 = vmatprep.subr.bf16.mxu1 %v2173_v21 }
 0x786   :  { %v946_v26 = vmax.f32 %v945_v25, 0.0  ;;  %v2177_v25 = vld [vmem:[#allocation8 + $0x1d0] sm:$0xff]  }
 0x788   :  { %v947_v27 = vpack.c.bf16 %v946_v26, %v946_v26  ;;  %v2178_v26 = vld [vmem:[#allocation8 + $0x190] sm:$0xff]  }
 0x78a   :  { %966 = vrot.lane.b32.xlu1 %v947_v27, %s2362_s23  ;;  %v2179_v27 = vld [vmem:[#allocation8 + $0x1d8] sm:$0xff]  }
 0x7fc   :  { %v967_v28 = vpop.permute.xlu1 %966 }
 0x7fd   :  { %2042 = vmatmul.mubr.msk.bf16.vlgmr.msra.gmra.mrb[12].mxu0 %vm402_vm2, %v967_v28  ;;  %v2180_v28 = vld [vmem:[#allocation8 + $0x198] sm:$0xff]  }
 0x7fe   :  { %1945 = vmatpush3.bf16.msra.mxu0 %v2154_v30  ;;  %v2182_v30 = vld [vmem:[#allocation8 + $0x1a0] sm:$0xff]  }
 0x7ff   :  { %1946 = vmatprep.subr.bf16.mxu0 %v2155_v31  ;;  %v2183_v31 = vld [vmem:[#allocation8 + $0x1e8] sm:$0xff]  }
 0x802   :  { %1947 = vmatpush3.bf16.msra.mxu0 %v2156_v32  ;;  %v1825_v32 = vld [vmem:[%s2651_s7 + $0x3] ss:$0 sm:$0xff] }
 0x803   :  { %1948 = vmatprep.subr.bf16.mxu0 %v2157_v33  ;;  %v2184_v33 = vld [vmem:[#allocation8 + $0x1a8] sm:$0xff]  }
 0x806   :  { %1949 = vmatpush3.bf16.msra.mxu0 %v2158_v34  ;;  %v2185_v34 = vld [vmem:[#allocation8 + $0x1f0] sm:$0xff]  }
 0x807   :  { %1950 = vmatprep.subr.bf16.mxu0 %v2159_v35 }
 0x80a   :  { %1951 = vmatpush3.bf16.msra.mxu0 %v2160_v36 }
 0x80b   :  { %1952 = vmatprep.subr.bf16.mxu0 %v2161_v37 }
 0x80e   :  { %1953 = vmatpush3.bf16.msra.mxu0 %v2162_v38 }
 0x80f   :  { %1954 = vmatprep.subr.bf16.mxu0 %v2163_v39  ;;  %v2186_v39 = vld [vmem:[#allocation8 + $0x1b0] sm:$0xff]  }
 0x812   :  { %1955 = vmatpush3.bf16.msra.mxu0 %v2164_v41 }
 0x813   :  { %1956 = vmatprep.subr.bf16.mxu0 %v2165_v42 }
 0x816   :  { %1957 = vmatpush3.bf16.msra.mxu0 %v2166_v47  ;;  %v2188_v47 = vld [vmem:[#allocation8 + $0x1b8] sm:$0xff]  }
 0x817   :  { %1958 = vmatprep.subr.bf16.mxu0 %v2167_v53  ;;  %v1848_v53 = vld [vmem:[%s2649_s5 + $0x4] ss:$0 sm:$0xff] }
 0x81a   :  { %1959 = vmatpush3.bf16.msra.mxu0 %v2168_v55 }
 0x81b   :  { %2057 = vmatprep.subr.bf16.mxu0 %v2369_v0 }
 0x8d0   :  { %v1029_v43 = vpop.f32.mrb[12].mxu0 }
 0x8d1   :  { %v1030_v44 = vadd.f32 %v1800_v40, %v1029_v43  ;;  %v2043_v45 = vpop.f32.mrb[13].mxu0 }
 0x8d2   :  { %v1032_v46 = vpop.f32.mrb[14].mxu0  ;;  %v2187_v45 = vld [vmem:[#allocation8 + $0x1f8] sm:$0xff]  }
 0x8d3   :  { %v1035_v48 = vadd.f32 %v1935_v22, %v1030_v44  ;;  %v2044_v49 = vpop.f32.mrb[15].mxu0  ;;  %v2174_v22 = vld [vmem:[#allocation8 + $0x180] sm:$0xff]  }
 0x8d5   :  { %v1036_v50 = vsel %vm402_vm2, %v1035_v48, -inf  ;;  %v1053_v51 = vmax.f32 %v1035_v48, 0.0 }
 0x8d6   :  { %v1037_v52 = vrot.slane %v1036_v50, 4 }
 0x8d7   :  { %1055 = vrot.lane.b32.xlu1 %v1053_v51, %s2362_s23 }
 0x8d8   :  { %v1038_v54 = vmax.f32 %v1036_v50, %v1037_v52 }
 0x8da   :  { %v1039_v56 = vrot.slane %v1038_v54, 2 }
 0x8dc   :  { %v1040_v57 = vmax.f32 %v1038_v54, %v1039_v56 }
 0x8de   :  { %v1041_v58 = vrot.slane %v1040_v57, 1 }
 0x8e0   :  { %v1042_v59 = vmax.f32 %v1040_v57, %v1041_v58 }
 0x8e2   :  { %v1043_v60 = vmax.f32 %v1042_v59, 0.0 }
 0x8e4   :  { %1045 = vrot.lane.b32.xlu0 %v1043_v60, %s2362_s23 }
 0x8e8   :  { %1237 = vrot.lane.b32.xlu0 %v1823_v61, %s2362_s23  ;;  %v2189_v61 = vld [vmem:[#allocation10 + $0x80] sm:$0xff]  }
 0x949   :  { %v1056_v62 = vpop.permute.xlu1 %1055 }
 0x94a   :  { %v1058_v2 = vsel %vm402_vm2, %v1035_v48, %v1056_v62  ;;  %v2190_v62 = vld [vmem:[#allocation10 + $0x88] sm:$0xff]  }
 0x94b   :  { %v1059_v5 = vpack.c.bf16 %v1058_v2, %v1058_v2 }
 0x956   :  { %v1046_v63 = vpop.permute.xlu0 %1045 }
 0x957   :  { %v1048_v1 = vsel %vm402_vm2, %v1042_v59, %v1046_v63  ;;  %v2191_v63 = vld [vmem:[#allocation10 + $0x90] sm:$0xff]  }
 0x958   :  { %v1052_v3 = vrot.slane %v1048_v1, %v2546_v15  ;;  %v2192_v1 = vld [vmem:[#allocation10 + $0x98] sm:$0xff]  }
 0x95a   :  { %v1060_v4 = vpack.c.bf16 %v1052_v3, %v1052_v3  ;;  %v1238_v12 = vpop.permute.xlu0 %1237 }
 0x95c   :  { %1222 = vmatprep.mubr.bf16.mxu0 %v1060_v4 }
 0x95d   :  { %1223 = vmatmul.mubr.bf16.vlgmr.msra.gmra.mrb[16].mxu0 %v1059_v5 }
 0x95e   :  { %2065 = vmatprep.mubr.msk.bf16.mxu0 %vm2370_vm0, %v2369_v0  ;;  %2058 = vmatpush3.bf16.msra.mxu0 %v2189_v61 }
 0x95f   :  { %2059 = vmatprep.subr.bf16.mxu0 %v2369_v0 }
 0x962   :  { %2060 = vmatpush3.bf16.msra.mxu0 %v2190_v62 }
 0x963   :  { %2061 = vmatprep.subr.bf16.mxu0 %v2369_v0 }
 0x966   :  { %2062 = vmatpush3.bf16.msra.mxu0 %v2191_v63 }
 0x967   :  { %2063 = vmatprep.subr.bf16.mxu0 %v2369_v0 }
 0x96a   :  { %2064 = vmatpush3.bf16.msra.mxu0 %v2192_v1 }
 0x96b   :  { %2069 = vmatprep.subr.bf16.mxu0 %v2369_v0 }
 0xa30   :  { %v1960_v10 = vpop.f32.mrb[16].mxu0 }
 0xa31   :  { %v1961_v11 = vpop.f32.mrb[17].mxu0 }
 0xa32   :  { %v1962_v13 = vadd.f32 %v1961_v11, %v1960_v10  ;;  %v1963_v14 = vpop.f32.mrb[18].mxu0  ;;  %v2193_v11 = vld [vmem:[#allocation11] sm:$0xff]  }
 0xa33   :  { %v1964_v16 = vpop.f32.mrb[19].mxu0  ;;  %v2196_v14 = vld [vmem:[#allocation11 + $0x18] sm:$0xff]  }
 0xa34   :  { %v1240_v17 = vadd.f32 %v1962_v13, %v1238_v12  ;;  %v2194_v12 = vld [vmem:[#allocation11 + $0x8] sm:$0xff]  }
 0xa35   :  { %v1850_v16 = vld [vmem:[%s2651_s7 + $0x4] ss:$0 sm:$0xff] }
 0xa36   :  { %v1241_v18 = vmax.f32 %v1240_v17, 0.0 }
 0xa38   :  { %v1242_v19 = vpack.c.bf16 %v1241_v18, %v1241_v18 }
 0xa3a   :  { %1261 = vrot.lane.b32.xlu1 %v1242_v19, %s2362_s23 }
 0xaac   :  { %v1262_v20 = vpop.permute.xlu1 %1261 }
 0xaad   :  { %2054 = vmatmul.mubr.msk.bf16.vlgmr.msra.gmra.mrb[12].mxu1 %vm402_vm2, %v1262_v20 }
 0xaae   :  { %1972 = vmatpush3.bf16.msra.mxu1 %v2174_v22 }
 0xaaf   :  { %1973 = vmatprep.subr.bf16.mxu1 %v2175_v23 }
 0xab2   :  { %1974 = vmatpush3.bf16.msra.mxu1 %v2176_v24 }
 0xab3   :  { %1975 = vmatprep.subr.bf16.mxu1 %v2177_v25 }
 0xab6   :  { %1976 = vmatpush3.bf16.msra.mxu1 %v2178_v26 }
 0xab7   :  { %1977 = vmatprep.subr.bf16.mxu1 %v2179_v27 }
 0xaba   :  { %1978 = vmatpush3.bf16.msra.mxu1 %v2180_v28 }
 0xabb   :  { %1979 = vmatprep.subr.bf16.mxu1 %v2181_v29 }
 0xabe   :  { %1980 = vmatpush3.bf16.msra.mxu1 %v2182_v30 }
 0xabf   :  { %1981 = vmatprep.subr.bf16.mxu1 %v2183_v31  ;;  %v1643_v31 = vld [vmem:[%s2653_s9] sm:$0x1] }
 0xac2   :  { %1982 = vmatpush3.bf16.msra.mxu1 %v2184_v33 }
 0xac3   :  { %1983 = vmatprep.subr.bf16.mxu1 %v2185_v34 }
 0xac6   :  { %1984 = vmatpush3.bf16.msra.mxu1 %v2186_v39 }
 0xac7   :  { %1985 = vmatprep.subr.bf16.mxu1 %v2187_v45 }
 0xaca   :  { %1986 = vmatpush3.bf16.msra.mxu1 %v2188_v47 }
 0xb80   :  { %v1324_v35 = vpop.f32.mrb[12].mxu1 }
 0xb81   :  { %v1325_v36 = vadd.f32 %v1825_v32, %v1324_v35  ;;  %v2055_v37 = vpop.f32.mrb[13].mxu1 }
 0xb82   :  { %v1327_v38 = vpop.f32.mrb[14].mxu1 }
 0xb83   :  { %v1330_v40 = vadd.f32 %v1962_v13, %v1325_v36  ;;  %v2056_v41 = vpop.f32.mrb[15].mxu1  ;;  %v2195_v13 = vld [vmem:[#allocation11 + $0x10] sm:$0xff]  }
 0xb85   :  { %v1331_v42 = vsel %vm402_vm2, %v1330_v40, -inf  ;;  %v1348_v43 = vmax.f32 %v1330_v40, 0.0 }
 0xb86   :  { %v1332_v44 = vrot.slane %v1331_v42, 4 }
 0xb87   :  { %1350 = vrot.lane.b32.xlu1 %v1348_v43, %s2362_s23 }
 0xb88   :  { %v1333_v46 = vmax.f32 %v1331_v42, %v1332_v44 }
 0xb8a   :  { %v1334_v48 = vrot.slane %v1333_v46, 2 }
 0xb8c   :  { %v1335_v49 = vmax.f32 %v1333_v46, %v1334_v48 }
 0xb8e   :  { %v1336_v50 = vrot.slane %v1335_v49, 1 }
 0xb90   :  { %v1337_v51 = vmax.f32 %v1335_v49, %v1336_v50 }
 0xb92   :  { %v1338_v52 = vmax.f32 %v1337_v51, 0.0 }
 0xb94   :  { %1340 = vrot.lane.b32.xlu0 %v1338_v52, %s2362_s23 }
 0xb98   :  { %1532 = vrot.lane.b32.xlu0 %v1848_v53, %s2362_s23 }
 0xbf9   :  { %v1351_v54 = vpop.permute.xlu1 %1350 }
 0xbfa   :  { %v1353_v57 = vsel %vm402_vm2, %v1330_v40, %v1351_v54 }
 0xbfb   :  { %v1354_v60 = vpack.c.bf16 %v1353_v57, %v1353_v57 }
 0xc06   :  { %v1341_v55 = vpop.permute.xlu0 %1340 }
 0xc07   :  { %v1343_v56 = vsel %vm402_vm2, %v1337_v51, %v1341_v55 }
 0xc08   :  { %v1347_v58 = vrot.slane %v1343_v56, %v2546_v15 }
 0xc0a   :  { %v1355_v59 = vpack.c.bf16 %v1347_v58, %v1347_v58  ;;  %v1533_v3 = vpop.permute.xlu0 %1532 }
 0xc0c   :  { %1517 = vmatprep.mubr.bf16.mxu1 %v1355_v59 }
 0xc0d   :  { %1518 = vmatmul.mubr.bf16.vlgmr.msra.gmra.mrb[16].mxu1 %v1354_v60 }
 0xce0   :  { %v1987_v15 = vpop.f32.mrb[16].mxu1 }
 0xce1   :  { %v1988_v2 = vpop.f32.mrb[17].mxu1 }
 0xce2   :  { %v1989_v4 = vadd.f32 %v1988_v2, %v1987_v15  ;;  %v1990_v5 = vpop.f32.mrb[18].mxu1 }
 0xce3   :  { %v1991_v6 = vpop.f32.mrb[19].mxu1 }
 0xce4   :  { %v1535_v7 = vadd.f32 %v1989_v4, %v1533_v3 }
 0xce6   :  { %v1536_v8 = vmax.f32 %v1535_v7, 0.0 }
 0xce8   :  { %v1537_v9 = vpack.c.bf16 %v1536_v8, %v1536_v8 }
 0xcea   :  { %1556 = vrot.lane.b32.xlu1 %v1537_v9, %s2362_s23 }
 0xd5c   :  { %v1557_v10 = vpop.permute.xlu1 %1556 }
 0xd5d   :  { %2066 = vmatmul.mubr.msk.bf16.vlgmr.msra.gmra.mrb[20].mxu0 %vm402_vm2, %v1557_v10 }
 0xd5e   :  { %2077 = vmatprep.mubr.msk.bf16.mxu0 %vm2370_vm0, %v2369_v0  ;;  %2070 = vmatpush3.bf16.msra.mxu0 %v2193_v11 }
 0xd5f   :  { %2071 = vmatprep.subr.bf16.mxu0 %v2369_v0 }
 0xd62   :  { %2072 = vmatpush3.bf16.msra.mxu0 %v2194_v12 }
 0xd63   :  { %2073 = vmatprep.subr.bf16.mxu0 %v2369_v0 }
 0xd66   :  { %2074 = vmatpush3.bf16.msra.mxu0 %v2195_v13 }
 0xd67   :  { %2075 = vmatprep.subr.bf16.mxu0 %v2369_v0 }
 0xd6a   :  { %2076 = vmatpush3.bf16.msra.mxu0 %v2196_v14 }
 0xe30   :  { %v1619_v17 = vpop.f32.mrb[20].mxu0 }
 0xe31   :  { %v1620_v18 = vadd.f32 %v1850_v16, %v1619_v17  ;;  %v2067_v19 = vpop.f32.mrb[21].mxu0 }
 0xe32   :  { %v1622_v20 = vpop.f32.mrb[22].mxu0 }
 0xe33   :  { %v1625_v21 = vadd.f32 %v1989_v4, %v1620_v18  ;;  %v2068_v22 = vpop.f32.mrb[23].mxu0 }
 0xe35   :  { %v1626_v23 = vsel %vm402_vm2, %v1625_v21, -inf }
 0xe36   :  { %v1627_v24 = vrot.slane %v1626_v23, 4 }
 0xe38   :  { %v1628_v25 = vmax.f32 %v1626_v23, %v1627_v24 }
 0xe3a   :  { %v1629_v26 = vrot.slane %v1628_v25, 2 }
 0xe3c   :  { %v1630_v27 = vmax.f32 %v1628_v25, %v1629_v26 }
 0xe3e   :  { %v1631_v28 = vrot.slane %v1630_v27, 1 }
 0xe40   :  { %v1632_v0 = vmax.f32 %v1630_v27, %v1631_v28 }
 0xe42   :  { %v1633_v29 = vmax.f32 %v1632_v0, 0.0 }
 0xe44   :  { %v1634_v30 = vpack.c.bf16 %v1633_v29, %v1633_v29 }
 0xe46   :  { %2078 = vmatmul.mubr.msk.bf16.vlgmr.msra.gmra.mrb[24].mxu0 %vm402_vm2, %v1634_v30 }
 0xf19   :  { %v1705_v32 = vpop.f32.mrb[24].mxu0 }
 0xf1a   :  { %v1706_v33 = vadd.f32 %v1705_v32, %v1643_v31  ;;  %v2079_v34 = vpop.f32.mrb[25].mxu0 }
 0xf1b   :  { %v1708_v35 = vpop.f32.mrb[26].mxu0 }
 0xf1c   :  { %1711 = vst [vmem:[#allocation13] sm:$0x1] %v1706_v33  ;;  %v2080_v36 = vpop.f32.mrb[27].mxu0 }
 0xf1d   :  { %2340 = shalt.err (!%p2337_p10)
}
 0xf1e   :  { %s2341_s9 = scalar_lea.hbm %s2654_s10, 16 }
 0xf1f   :  { %p2342_p11 = scmp.ne.s32.totalorder %s2654_s10, %s2341_s9  ;;  %p2345_p12 = scmp.lt.u32.totalorder %s2341_s9, %s2654_s10 }
 0xf21   :  { %p2347_p13 = pnand %p2345_p12, %p2342_p11 }
 0xf23   :  { %2350 = shalt.err (!%p2347_p13)
}
 0xf24   :  { %1721 = dma.vmem_to_hbm [thread:$0]  %s1719_s0, 16, %s2654_s10, [#allocation4]  }
 0xf25   :  { %2359 = dma.done.wait [#allocation4], 16  }
 0xf26   :  { %2360 = vsyncadd [#allocation4], 4294967280 }
 0xf27   :  { %1725 = vsyncpa [#allocation3], 1 }
 0xf28   :  { %1726 = vsyncpa [#allocation6], 1 }
 0xf29   :  { %1727 = vsyncpa [#allocation9], 1 }
 0xf2a   :  { %1728 = vsyncpa [#allocation12], 1 }
 0xf2b   :  { %1729 = vsyncpa [#allocation4], 1 }

</bundles_post_ra>
